<compile_context>
chip_gen: v6e
topology: v6e:2x2x1
jax: 0.10.0
libtpu: 0.0.40
codegen_flags: <defaults>
</compile_context>

<pallas_src>
import functools

import jax
import jax.numpy as jnp
from jax.experimental import pallas as pl
from jax.experimental.pallas import tpu as pltpu


# ---------------- kernel-side helpers ----------------

def _mm(a, w_ref):
    # bf16 MXU matmul with f32 accumulation; weights are stored bf16 host-side.
    return jnp.dot(a.astype(jnp.bfloat16), w_ref[...],
                   preferred_element_type=jnp.float32)


def _relu(x):
    return jnp.maximum(x, 0.0)


def _hardsigmoid(x):
    return jnp.clip(x * (1.0 / 6.0) + 0.5, 0.0, 1.0)


def _hardswish(x):
    return x * _hardsigmoid(x)


def _act_bias(y_f32, b_ref, act, cdt):
    # matmul output (f32) + bias, activation done in the chip-appropriate compute dtype.
    return act(y_f32.astype(cdt) + b_ref[...].astype(cdt))


def _dw_se(e0, e1, dw, se, act, se_max, cdt):
    """Depthwise 2x2 mix over the length planes + squeeze-excitation rescale.

    BN scales are pre-folded into the depthwise coefficients; returns the two rescaled
    planes ready for the (per-plane) project matmuls.
    """
    (w00, w01, w10, w11, db) = dw
    (W1, b1, W2, b2) = se
    c00 = w00[...].astype(cdt); c01 = w01[...].astype(cdt)
    c10 = w10[...].astype(cdt); c11 = w11[...].astype(cdt)
    cdb = db[...].astype(cdt)

    d0 = act(c00 * e0 + c01 * e1 + cdb)
    d1 = act(c10 * e0 + c11 * e1 + cdb)

    # SE: pool over L (avg or max), fc1 + ReLU, fc2 + Hardsigmoid, rescale both planes.
    pooled = jnp.maximum(d0, d1) if se_max else (d0 + d1) * 0.5
    s = _relu(_mm(pooled, W1) + b1[...])
    scale = _hardsigmoid(_mm(s, W2) + b2[...]).astype(cdt)
    return d0 * scale, d1 * scale


def minivilles_kernel(*refs, compute_dtype, bt, a_dim):
    cdt = compute_dtype
    xs_ref, valid_ref = refs[0], refs[1]
    Wf, fb = refs[2], refs[3]
    (We, eb, t00, t01, t10, t11, tdb, tW1, tb1, tW2, tb2, tWp, tpb) = refs[4:17]
    (Wh, ebh, h00, h01, h10, h11, hdb, hW1, hb1, hW2, hb2, hWp, hpb) = refs[17:30]
    Wl1_0, Wl1_1, bl1, Wl2, bl2 = refs[30:35]
    out_ref = refs[35]

    # first_layer: Linear(C->C, no bias) + BatchNorm1d(C) (scale folded), no activation.
    # Both length planes are pre-stacked along rows host-side: xs = [x(l=0); x(l=1)].
    xs = _mm(xs_ref[...], Wf) + fb[...]                                  # (2*bt, C) f32

    # trunk: InvertedResidual1d(C, 2C, C, k=2, ReLU, SE-avg) with residual connection.
    # TODO(synk): F.dropout is identity here (inference / eval-mode forward).
    e = _act_bias(_mm(xs, We), eb, _relu, cdt)                           # (2*bt, E)
    e0, e1 = e[:bt], e[bt:]
    g0, g1 = _dw_se(e0, e1, (t00, t01, t10, t11, tdb),
                    (tW1, tb1, tW2, tb2), act=_relu, se_max=False, cdt=cdt)
    # project per length plane (avoids a row-concat copy) + residual
    t0 = _mm(g0, tWp) + tpb[...] + xs[:bt]                               # (bt, C) f32
    t1 = _mm(g1, tWp) + tpb[...] + xs[bt:]

    # pi & v head IR blocks fused channel-wise (Hardswish, SE-max), per length plane.
    he0 = _act_bias(_mm(t0, Wh), ebh, _hardswish, cdt)                   # (bt, 2E)
    he1 = _act_bias(_mm(t1, Wh), ebh, _hardswish, cdt)
    hg0, hg1 = _dw_se(he0, he1, (h00, h01, h10, h11, hdb),
                      (hW1, hb1, hW2, hb2), act=_hardswish, se_max=True, cdt=cdt)
    # project (block-diagonal pi|v) + residual replicated across both channel halves
    y0 = _mm(hg0, hWp) + hpb[...] + jnp.concatenate([t0, t0], axis=-1)   # (bt, 2C)
    y1 = _mm(hg1, hWp) + hpb[...] + jnp.concatenate([t1, t1], axis=-1)

    # fused head linears: pi occupies lanes [0, A), v lanes [A, A+P).
    # torch Flatten of (B, C, 2) is channel-major with length innermost -> one matmul
    # per length plane with de-interleaved weight columns.
    h = _relu(_mm(y0, Wl1_0) + _mm(y1, Wl1_1) + bl1[...])                # (bt, OUT) f32
    h = _mm(h, Wl2) + bl2[...]

    # policy: mask invalid actions (lowvalue buffer), log_softmax over the action lanes.
    # Padded lanes and the value lanes carry valid == 0 and underflow out of the sum.
    pi = jnp.where(valid_ref[...] > 0.5, h, -100000000.0)
    m = jnp.max(pi, axis=1, keepdims=True)
    lse = jnp.log(jnp.sum(jnp.exp(pi - m), axis=1, keepdims=True)) + m
    logpi = pi - lse

    # value: tanh on the value lanes; single lane-dense fused store.
    lane = jax.lax.broadcasted_iota(jnp.int32, h.shape, 1)
    out_ref[...] = jnp.where(lane < a_dim, logpi, jnp.tanh(h))


# ---------------- host-side parameter construction (deterministic, eval-mode) ----------------

def _make_divisible(v, divisor, min_value=None):
    if min_value is None:
        min_value = divisor
    new_v = max(min_value, int(v + divisor / 2) // divisor * divisor)
    if new_v < 0.9 * v:
        new_v += divisor
    return new_v


def _uniform(key, shape, fan_in):
    bound = 1.0 / float(fan_in) ** 0.5
    return jax.random.uniform(key, shape, jnp.float32, -bound, bound)


def _bn_fold(n, eps=1e-5):
    # freshly-initialised BatchNorm1d in eval mode: gamma=1, beta=0, mean=0, var=1.
    # TODO(synk): for a real checkpoint fold trained running stats / gamma / beta here.
    scale = jnp.full((n,), 1.0 / (1.0 + eps) ** 0.5, jnp.float32)
    bias = jnp.zeros((n,), jnp.float32)
    return scale, bias


def _raw_ir_params(key, c_in, e, s, c_out):
    """Raw (pre-transposed) parameters of one InvertedResidual1d + its eval-mode BN stats."""
    ks = jax.random.split(key, 7)
    es, eb = _bn_fold(e)
    dsc, db = _bn_fold(e)
    ps, pb = _bn_fold(c_out)
    return dict(
        We=_uniform(ks[0], (c_in, e), c_in), es=es, eb=eb,              # expand W^T + BN(E)
        Wd=_uniform(ks[1], (2, 2), 2), ds=dsc, db=db,                   # depthwise 2x2 + BN(E)
        W1=_uniform(ks[2], (e, s), e), b1=_uniform(ks[3], (s,), e),     # SE fc1 W^T, b
        W2=_uniform(ks[4], (s, e), s), b2=_uniform(ks[5], (e,), s),     # SE fc2 W^T, b
        Wp=_uniform(ks[6], (e, c_out), e), ps=ps, pb=pb,                # project W^T + BN(C)
    )


def _fold_ir(p):
    """Fold BN scales into the bias-free linear weights; order matches the kernel unpack."""
    wd = [(p["Wd"][l, k] * p["ds"])[None, :] for l in (0, 1) for k in (0, 1)]
    return [
        (p["We"] * p["es"][None, :]).astype(jnp.bfloat16), p["eb"][None, :],
        *wd, p["db"][None, :],
        p["W1"].astype(jnp.bfloat16), p["b1"][None, :],
        p["W2"].astype(jnp.bfloat16), p["b2"][None, :],
        (p["Wp"] * p["ps"][None, :]).astype(jnp.bfloat16), p["pb"][None, :],
    ]


def _block_diag(a, b):
    r1, c1 = a.shape
    r2, c2 = b.shape
    top = jnp.concatenate([a, jnp.zeros((r1, c2), a.dtype)], axis=1)
    bot = jnp.concatenate([jnp.zeros((r2, c1), b.dtype), b], axis=1)
    return jnp.concatenate([top, bot], axis=0)


def _fold_fused_heads(p_pi, p_v):
    """Fuse the pi-head and v-head IR blocks channel-wise into one weight set (E -> 2E)."""
    cat = lambda a, b: jnp.concatenate([a, b])
    wd = [cat(p_pi["Wd"][l, k] * p_pi["ds"], p_v["Wd"][l, k] * p_v["ds"])[None, :]
          for l in (0, 1) for k in (0, 1)]
    return [
        jnp.concatenate([p_pi["We"] * p_pi["es"][None, :],
                         p_v["We"] * p_v["es"][None, :]], axis=1).astype(jnp.bfloat16),
        cat(p_pi["eb"], p_v["eb"])[None, :],
        *wd, cat(p_pi["db"], p_v["db"])[None, :],
        _block_diag(p_pi["W1"], p_v["W1"]).astype(jnp.bfloat16),
        cat(p_pi["b1"], p_v["b1"])[None, :],
        _block_diag(p_pi["W2"], p_v["W2"]).astype(jnp.bfloat16),
        cat(p_pi["b2"], p_v["b2"])[None, :],
        _block_diag(p_pi["Wp"] * p_pi["ps"][None, :],
                    p_v["Wp"] * p_v["ps"][None, :]).astype(jnp.bfloat16),
        cat(p_pi["pb"], p_v["pb"])[None, :],
    ]


def _fused_head_linears(key_pi, key_v, c, a, p_dim, out_pad):
    """Fuse the PI (Linear(2C,A),ReLU,Linear(A,A)) and V (Linear(2C,P),ReLU,Linear(P,P))
    stacks into one lane-dense chain: pi lanes [0, A), v lanes [A, A+P), padded to out_pad.
    Input is the 2C-wide [pi-IR | v-IR] residual output, one matmul per length plane."""
    kp = jax.random.split(key_pi, 4)
    kv = jax.random.split(key_v, 4)
    Wpi1 = _uniform(kp[0], (a, 2 * c), 2 * c); bpi1 = _uniform(kp[1], (a,), 2 * c)
    Wpi2 = _uniform(kp[2], (a, a), a);         bpi2 = _uniform(kp[3], (a,), a)
    Wv1 = _uniform(kv[0], (p_dim, 2 * c), 2 * c); bv1 = _uniform(kv[1], (p_dim,), 2 * c)
    Wv2 = _uniform(kv[2], (p_dim, p_dim), p_dim); bv2 = _uniform(kv[3], (p_dim,), p_dim)

    # torch Flatten of (B, C, 2) has length innermost: flat[:, 2*ch + l].
    Wl1_0 = (jnp.zeros((2 * c, out_pad), jnp.float32)
             .at[:c, :a].set(Wpi1[:, 0::2].T)
             .at[c:, a:a + p_dim].set(Wv1[:, 0::2].T))
    Wl1_1 = (jnp.zeros((2 * c, out_pad), jnp.float32)
             .at[:c, :a].set(Wpi1[:, 1::2].T)
             .at[c:, a:a + p_dim].set(Wv1[:, 1::2].T))
    bl1 = jnp.zeros((1, out_pad), jnp.float32).at[0, :a].set(bpi1).at[0, a:a + p_dim].set(bv1)
    Wl2 = (jnp.zeros((out_pad, out_pad), jnp.float32)
           .at[:a, :a].set(Wpi2.T)
           .at[a:a + p_dim, a:a + p_dim].set(Wv2.T))
    bl2 = jnp.zeros((1, out_pad), jnp.float32).at[0, :a].set(bpi2).at[0, a:a + p_dim].set(bv2)
    return [Wl1_0.astype(jnp.bfloat16), Wl1_1.astype(jnp.bfloat16), bl1,
            Wl2.astype(jnp.bfloat16), bl2]


def build_params(key, C, A, P):
    E = 2 * C                           # nn_version == 80: exp_channels = 2 * nb_vect
    S = _make_divisible(E // 4, 8)
    OUT = max(128, pl.cdiv(A + P, 128) * 128)   # fused lane-dense output width
    keys = jax.random.split(key, 6)

    fs, fb = _bn_fold(C)
    arrays = [(_uniform(keys[0], (C, C), C) * fs[None, :]).astype(jnp.bfloat16),
              fb[None, :]]                                                  # first_layer
    arrays += _fold_ir(_raw_ir_params(keys[1], C, E, S, C))                 # trunk block
    arrays += _fold_fused_heads(_raw_ir_params(keys[2], C, E, S, C),
                                _raw_ir_params(keys[3], C, E, S, C))        # fused pi|v IR
    arrays += _fused_head_linears(keys[4], keys[5], C, A, P, OUT)           # fused head linears
    return dict(arrays=arrays, C=C, A=A, P=P, OUT=OUT)


# ---------------- wrapper ----------------

def _choose_tiling(B):
    """Batch tile (multiple of 16 rows) and tile count (>= 2 so v7x megacore shards)."""
    MAX_BT = 1024
    bt = min(MAX_BT, max(16, pl.cdiv(B, 2)))
    bt = pl.cdiv(bt, 16) * 16
    n_tiles = max(2, pl.cdiv(B, bt))
    return bt, n_tiles


def _default_compute_dtype():
    try:
        kind = jax.devices()[0].device_kind.lower()
    except Exception:
        kind = ""
    # bf16 elementwise only on chips with a bf16 VPU/EUP (v6e and later); f32 otherwise.
    if ("v5" not in kind) and any(tag in kind for tag in ("v6", "v7", "7x")):
        return jnp.bfloat16
    return jnp.float32


def minivilles_forward(board, valid_actions, params, compute_dtype=None):
    B, C, L = board.shape
    assert L == 2, "depthwise kernel size is 2 -> vect_dim must be 2"
    assert C == params["C"]
    A, P, OUT = params["A"], params["P"], params["OUT"]
    arrays = params["arrays"]
    if compute_dtype is None:
        compute_dtype = _default_compute_dtype()

    Bt, n_tiles = _choose_tiling(B)
    B_pad = n_tiles * Bt
    pad = B_pad - B

    # Board planes as bf16; the two length planes are stacked along rows per batch tile
    # host-side so the kernel never performs a sublane concat.
    x0 = jnp.pad(board[:, :, 0], ((0, pad), (0, 0))).astype(jnp.bfloat16)
    x1 = jnp.pad(board[:, :, 1], ((0, pad), (0, 0))).astype(jnp.bfloat16)
    xs = jnp.concatenate([x0.reshape(n_tiles, Bt, C),
                          x1.reshape(n_tiles, Bt, C)], axis=1).reshape(n_tiles * 2 * Bt, C)

    # Valid-action mask as bf16 (only compared against 0.5 in-kernel); lane-dense to OUT.
    valid = jnp.zeros((B_pad, OUT), jnp.bfloat16).at[:B, :A].set(
        valid_actions.astype(jnp.bfloat16))

    data_specs = [pl.BlockSpec((2 * Bt, C), lambda i: (i, 0)),
                  pl.BlockSpec((Bt, OUT), lambda i: (i, 0))]
    # Weights: whole array, constant index map -> DMA'd once, VMEM-resident across steps.
    w_specs = [pl.BlockSpec(a.shape, lambda i: (0, 0)) for a in arrays]

    kernel = functools.partial(minivilles_kernel, compute_dtype=compute_dtype,
                               bt=Bt, a_dim=A)

    out = pl.pallas_call(
        kernel,
        grid=(n_tiles,),
        in_specs=data_specs + w_specs,
        out_specs=pl.BlockSpec((Bt, OUT), lambda i: (i, 0)),
        out_shape=jax.ShapeDtypeStruct((B_pad, OUT), jnp.float32),
        compiler_params=pltpu.CompilerParams(
            dimension_semantics=("parallel",),          # batch axis -> both TCs on v7x
            vmem_limit_bytes=32 * 1024 * 1024),
    )(xs, valid, *arrays)

    return out[:B, :A], out[:B, A:A + P]


if __name__ == "__main__":
    B = 2       # batch
    C = 32      # nb_vect (channels)
    L = 2       # vect_dim (== depthwise kernel size 2)
    A = 40      # action_size
    P = 2       # num_players

    key = jax.random.PRNGKey(0)
    k_board, k_valid, k_params = jax.random.split(key, 3)
    board = jax.random.normal(k_board, (B, C, L), jnp.float32)
    valid_actions = jax.random.uniform(k_valid, (B, A)) > 0.3

    params = build_params(k_params, C, A, P)
    log_pi, v = minivilles_forward(board, valid_actions, params)
    jax.block_until_ready((log_pi, v))

    assert log_pi.shape == (B, A) and v.shape == (B, P)
    assert bool(jnp.all(jnp.isfinite(log_pi))) and bool(jnp.all(jnp.isfinite(v)))
    # log_softmax consistency: probabilities over the valid actions sum to ~1.
    prob_sum = jnp.sum(jnp.exp(log_pi), axis=1)
    assert bool(jnp.all(jnp.abs(prob_sum - 1.0) < 1e-3))
    assert bool(jnp.all(jnp.abs(v) <= 1.0))
    print("KERNEL_OK")
</pallas_src>

<mosaic_0001>
module attributes {stable_mosaic.version = 11 : i64} {
  func.func @minivilles_kernel(%arg0: i32, %arg1: memref<32x32xbf16, #tpu.memory_space<vmem>>, %arg2: memref<16x128xbf16, #tpu.memory_space<vmem>>, %arg3: memref<32x32xbf16, #tpu.memory_space<vmem>>, %arg4: memref<1x32xf32, #tpu.memory_space<vmem>>, %arg5: memref<32x64xbf16, #tpu.memory_space<vmem>>, %arg6: memref<1x64xf32, #tpu.memory_space<vmem>>, %arg7: memref<1x64xf32, #tpu.memory_space<vmem>>, %arg8: memref<1x64xf32, #tpu.memory_space<vmem>>, %arg9: memref<1x64xf32, #tpu.memory_space<vmem>>, %arg10: memref<1x64xf32, #tpu.memory_space<vmem>>, %arg11: memref<1x64xf32, #tpu.memory_space<vmem>>, %arg12: memref<64x16xbf16, #tpu.memory_space<vmem>>, %arg13: memref<1x16xf32, #tpu.memory_space<vmem>>, %arg14: memref<16x64xbf16, #tpu.memory_space<vmem>>, %arg15: memref<1x64xf32, #tpu.memory_space<vmem>>, %arg16: memref<64x32xbf16, #tpu.memory_space<vmem>>, %arg17: memref<1x32xf32, #tpu.memory_space<vmem>>, %arg18: memref<32x128xbf16, #tpu.memory_space<vmem>>, %arg19: memref<1x128xf32, #tpu.memory_space<vmem>>, %arg20: memref<1x128xf32, #tpu.memory_space<vmem>>, %arg21: memref<1x128xf32, #tpu.memory_space<vmem>>, %arg22: memref<1x128xf32, #tpu.memory_space<vmem>>, %arg23: memref<1x128xf32, #tpu.memory_space<vmem>>, %arg24: memref<1x128xf32, #tpu.memory_space<vmem>>, %arg25: memref<128x32xbf16, #tpu.memory_space<vmem>>, %arg26: memref<1x32xf32, #tpu.memory_space<vmem>>, %arg27: memref<32x128xbf16, #tpu.memory_space<vmem>>, %arg28: memref<1x128xf32, #tpu.memory_space<vmem>>, %arg29: memref<128x64xbf16, #tpu.memory_space<vmem>>, %arg30: memref<1x64xf32, #tpu.memory_space<vmem>>, %arg31: memref<64x128xbf16, #tpu.memory_space<vmem>>, %arg32: memref<64x128xbf16, #tpu.memory_space<vmem>>, %arg33: memref<1x128xf32, #tpu.memory_space<vmem>>, %arg34: memref<128x128xbf16, #tpu.memory_space<vmem>>, %arg35: memref<1x128xf32, #tpu.memory_space<vmem>>, %arg36: memref<16x128xf32, #tpu.memory_space<vmem>>) attributes {dimension_semantics = [#tpu.dimension_semantics<parallel>], iteration_bounds = array<i64: 2>, scalar_prefetch = 0 : i64, scratch_operands = 0 : i64, tpu.core_type = #tpu.core_type<tc>, window_params = [{transform_indices = @transform_0, window_bounds = array<i64: 32, 32>}, {transform_indices = @transform_1, window_bounds = array<i64: 16, 128>}, {pipeline_mode = #tpu.pipeline_mode<synchronous>, transform_indices = @transform_2, window_bounds = array<i64: 32, 32>}, {pipeline_mode = #tpu.pipeline_mode<synchronous>, transform_indices = @transform_3, window_bounds = array<i64: 1, 32>}, {pipeline_mode = #tpu.pipeline_mode<synchronous>, transform_indices = @transform_4, window_bounds = array<i64: 32, 64>}, {pipeline_mode = #tpu.pipeline_mode<synchronous>, transform_indices = @transform_5, window_bounds = array<i64: 1, 64>}, {pipeline_mode = #tpu.pipeline_mode<synchronous>, transform_indices = @transform_6, window_bounds = array<i64: 1, 64>}, {pipeline_mode = #tpu.pipeline_mode<synchronous>, transform_indices = @transform_7, window_bounds = array<i64: 1, 64>}, {pipeline_mode = #tpu.pipeline_mode<synchronous>, transform_indices = @transform_8, window_bounds = array<i64: 1, 64>}, {pipeline_mode = #tpu.pipeline_mode<synchronous>, transform_indices = @transform_9, window_bounds = array<i64: 1, 64>}, {pipeline_mode = #tpu.pipeline_mode<synchronous>, transform_indices = @transform_10, window_bounds = array<i64: 1, 64>}, {pipeline_mode = #tpu.pipeline_mode<synchronous>, transform_indices = @transform_11, window_bounds = array<i64: 64, 16>}, {pipeline_mode = #tpu.pipeline_mode<synchronous>, transform_indices = @transform_12, window_bounds = array<i64: 1, 16>}, {pipeline_mode = #tpu.pipeline_mode<synchronous>, transform_indices = @transform_13, window_bounds = array<i64: 16, 64>}, {pipeline_mode = #tpu.pipeline_mode<synchronous>, transform_indices = @transform_14, window_bounds = array<i64: 1, 64>}, {pipeline_mode = #tpu.pipeline_mode<synchronous>, transform_indices = @transform_15, window_bounds = array<i64: 64, 32>}, {pipeline_mode = #tpu.pipeline_mode<synchronous>, transform_indices = @transform_16, window_bounds = array<i64: 1, 32>}, {pipeline_mode = #tpu.pipeline_mode<synchronous>, transform_indices = @transform_17, window_bounds = array<i64: 32, 128>}, {pipeline_mode = #tpu.pipeline_mode<synchronous>, transform_indices = @transform_18, window_bounds = array<i64: 1, 128>}, {pipeline_mode = #tpu.pipeline_mode<synchronous>, transform_indices = @transform_19, window_bounds = array<i64: 1, 128>}, {pipeline_mode = #tpu.pipeline_mode<synchronous>, transform_indices = @transform_20, window_bounds = array<i64: 1, 128>}, {pipeline_mode = #tpu.pipeline_mode<synchronous>, transform_indices = @transform_21, window_bounds = array<i64: 1, 128>}, {pipeline_mode = #tpu.pipeline_mode<synchronous>, transform_indices = @transform_22, window_bounds = array<i64: 1, 128>}, {pipeline_mode = #tpu.pipeline_mode<synchronous>, transform_indices = @transform_23, window_bounds = array<i64: 1, 128>}, {pipeline_mode = #tpu.pipeline_mode<synchronous>, transform_indices = @transform_24, window_bounds = array<i64: 128, 32>}, {pipeline_mode = #tpu.pipeline_mode<synchronous>, transform_indices = @transform_25, window_bounds = array<i64: 1, 32>}, {pipeline_mode = #tpu.pipeline_mode<synchronous>, transform_indices = @transform_26, window_bounds = array<i64: 32, 128>}, {pipeline_mode = #tpu.pipeline_mode<synchronous>, transform_indices = @transform_27, window_bounds = array<i64: 1, 128>}, {pipeline_mode = #tpu.pipeline_mode<synchronous>, transform_indices = @transform_28, window_bounds = array<i64: 128, 64>}, {pipeline_mode = #tpu.pipeline_mode<synchronous>, transform_indices = @transform_29, window_bounds = array<i64: 1, 64>}, {pipeline_mode = #tpu.pipeline_mode<synchronous>, transform_indices = @transform_30, window_bounds = array<i64: 64, 128>}, {pipeline_mode = #tpu.pipeline_mode<synchronous>, transform_indices = @transform_31, window_bounds = array<i64: 64, 128>}, {pipeline_mode = #tpu.pipeline_mode<synchronous>, transform_indices = @transform_32, window_bounds = array<i64: 1, 128>}, {pipeline_mode = #tpu.pipeline_mode<synchronous>, transform_indices = @transform_33, window_bounds = array<i64: 128, 128>}, {pipeline_mode = #tpu.pipeline_mode<synchronous>, transform_indices = @transform_34, window_bounds = array<i64: 1, 128>}, {transform_indices = @transform_35, window_bounds = array<i64: 16, 128>}]} {
    %c0 = arith.constant 0 : index
    %c0_0 = arith.constant 0 : index
    %0 = vector.load %arg1[%c0, %c0_0] : memref<32x32xbf16, #tpu.memory_space<vmem>>, vector<32x32xbf16>
    %c0_1 = arith.constant 0 : index
    %c0_2 = arith.constant 0 : index
    %1 = vector.load %arg3[%c0_1, %c0_2] : memref<32x32xbf16, #tpu.memory_space<vmem>>, vector<32x32xbf16>
    %cst = arith.constant dense<0.000000e+00> : vector<32x32xf32>
    %2 = tpu.matmul %0, %1, %cst {dimension_numbers = #tpu.dot_dimension_numbers<[1], [0], [0], [1], [0, 0, 1, 1], [], []>} : vector<32x32xbf16>, vector<32x32xbf16>, vector<32x32xf32> -> vector<32x32xf32>
    %c0_3 = arith.constant 0 : index
    %c0_4 = arith.constant 0 : index
    %3 = vector.load %arg4[%c0_3, %c0_4] : memref<1x32xf32, #tpu.memory_space<vmem>>, vector<1x32xf32>
    %4 = vector.broadcast %3 : vector<1x32xf32> to vector<32x32xf32>
    %5 = arith.addf %2, %4 : vector<32x32xf32>
    %6 = arith.truncf %5 : vector<32x32xf32> to vector<32x32xbf16>
    %c0_5 = arith.constant 0 : index
    %c0_6 = arith.constant 0 : index
    %7 = vector.load %arg5[%c0_5, %c0_6] : memref<32x64xbf16, #tpu.memory_space<vmem>>, vector<32x64xbf16>
    %cst_7 = arith.constant dense<0.000000e+00> : vector<32x64xf32>
    %8 = tpu.matmul %6, %7, %cst_7 {dimension_numbers = #tpu.dot_dimension_numbers<[1], [0], [0], [1], [0, 0, 1, 1], [], []>} : vector<32x32xbf16>, vector<32x64xbf16>, vector<32x64xf32> -> vector<32x64xf32>
    %c0_8 = arith.constant 0 : index
    %c0_9 = arith.constant 0 : index
    %9 = vector.load %arg6[%c0_8, %c0_9] : memref<1x64xf32, #tpu.memory_space<vmem>>, vector<1x64xf32>
    %10 = vector.broadcast %9 : vector<1x64xf32> to vector<32x64xf32>
    %11 = arith.addf %8, %10 : vector<32x64xf32>
    %cst_10 = arith.constant 0.000000e+00 : f32
    %12 = vector.broadcast %cst_10 : f32 to vector<32x64xf32>
    %13 = arith.maximumf %11, %12 : vector<32x64xf32>
    %14 = vector.extract_strided_slice %13 {offsets = [0, 0], sizes = [16, 64], strides = [1, 1]} : vector<32x64xf32> to vector<16x64xf32>
    %15 = vector.extract_strided_slice %13 {offsets = [16, 0], sizes = [16, 64], strides = [1, 1]} : vector<32x64xf32> to vector<16x64xf32>
    %c0_11 = arith.constant 0 : index
    %c0_12 = arith.constant 0 : index
    %16 = vector.load %arg7[%c0_11, %c0_12] : memref<1x64xf32, #tpu.memory_space<vmem>>, vector<1x64xf32>
    %c0_13 = arith.constant 0 : index
    %c0_14 = arith.constant 0 : index
    %17 = vector.load %arg8[%c0_13, %c0_14] : memref<1x64xf32, #tpu.memory_space<vmem>>, vector<1x64xf32>
    %c0_15 = arith.constant 0 : index
    %c0_16 = arith.constant 0 : index
    %18 = vector.load %arg9[%c0_15, %c0_16] : memref<1x64xf32, #tpu.memory_space<vmem>>, vector<1x64xf32>
    %c0_17 = arith.constant 0 : index
    %c0_18 = arith.constant 0 : index
    %19 = vector.load %arg10[%c0_17, %c0_18] : memref<1x64xf32, #tpu.memory_space<vmem>>, vector<1x64xf32>
    %c0_19 = arith.constant 0 : index
    %c0_20 = arith.constant 0 : index
    %20 = vector.load %arg11[%c0_19, %c0_20] : memref<1x64xf32, #tpu.memory_space<vmem>>, vector<1x64xf32>
    %21 = vector.broadcast %16 : vector<1x64xf32> to vector<16x64xf32>
    %22 = arith.mulf %21, %14 : vector<16x64xf32>
    %23 = vector.broadcast %17 : vector<1x64xf32> to vector<16x64xf32>
    %24 = arith.mulf %23, %15 : vector<16x64xf32>
    %25 = arith.addf %22, %24 : vector<16x64xf32>
    %26 = vector.broadcast %20 : vector<1x64xf32> to vector<16x64xf32>
    %27 = arith.addf %25, %26 : vector<16x64xf32>
    %cst_21 = arith.constant 0.000000e+00 : f32
    %28 = vector.broadcast %cst_21 : f32 to vector<16x64xf32>
    %29 = arith.maximumf %27, %28 : vector<16x64xf32>
    %30 = vector.broadcast %18 : vector<1x64xf32> to vector<16x64xf32>
    %31 = arith.mulf %30, %14 : vector<16x64xf32>
    %32 = vector.broadcast %19 : vector<1x64xf32> to vector<16x64xf32>
    %33 = arith.mulf %32, %15 : vector<16x64xf32>
    %34 = arith.addf %31, %33 : vector<16x64xf32>
    %35 = vector.broadcast %20 : vector<1x64xf32> to vector<16x64xf32>
    %36 = arith.addf %34, %35 : vector<16x64xf32>
    %cst_22 = arith.constant 0.000000e+00 : f32
    %37 = vector.broadcast %cst_22 : f32 to vector<16x64xf32>
    %38 = arith.maximumf %36, %37 : vector<16x64xf32>
    %39 = arith.addf %29, %38 : vector<16x64xf32>
    %cst_23 = arith.constant 5.000000e-01 : f32
    %40 = vector.broadcast %cst_23 : f32 to vector<16x64xf32>
    %41 = arith.mulf %39, %40 : vector<16x64xf32>
    %42 = arith.truncf %41 : vector<16x64xf32> to vector<16x64xbf16>
    %c0_24 = arith.constant 0 : index
    %c0_25 = arith.constant 0 : index
    %43 = vector.load %arg12[%c0_24, %c0_25] : memref<64x16xbf16, #tpu.memory_space<vmem>>, vector<64x16xbf16>
    %cst_26 = arith.constant dense<0.000000e+00> : vector<16x16xf32>
    %44 = tpu.matmul %42, %43, %cst_26 {dimension_numbers = #tpu.dot_dimension_numbers<[1], [0], [0], [1], [0, 0, 1, 1], [], []>} : vector<16x64xbf16>, vector<64x16xbf16>, vector<16x16xf32> -> vector<16x16xf32>
    %c0_27 = arith.constant 0 : index
    %c0_28 = arith.constant 0 : index
    %45 = vector.load %arg13[%c0_27, %c0_28] : memref<1x16xf32, #tpu.memory_space<vmem>>, vector<1x16xf32>
    %46 = vector.broadcast %45 : vector<1x16xf32> to vector<16x16xf32>
    %47 = arith.addf %44, %46 : vector<16x16xf32>
    %cst_29 = arith.constant 0.000000e+00 : f32
    %48 = vector.broadcast %cst_29 : f32 to vector<16x16xf32>
    %49 = arith.maximumf %47, %48 : vector<16x16xf32>
    %50 = arith.truncf %49 : vector<16x16xf32> to vector<16x16xbf16>
    %c0_30 = arith.constant 0 : index
    %c0_31 = arith.constant 0 : index
    %51 = vector.load %arg14[%c0_30, %c0_31] : memref<16x64xbf16, #tpu.memory_space<vmem>>, vector<16x64xbf16>
    %cst_32 = arith.constant dense<0.000000e+00> : vector<16x64xf32>
    %52 = tpu.matmul %50, %51, %cst_32 {dimension_numbers = #tpu.dot_dimension_numbers<[1], [0], [0], [1], [0, 0, 1, 1], [], []>} : vector<16x16xbf16>, vector<16x64xbf16>, vector<16x64xf32> -> vector<16x64xf32>
    %c0_33 = arith.constant 0 : index
    %c0_34 = arith.constant 0 : index
    %53 = vector.load %arg15[%c0_33, %c0_34] : memref<1x64xf32, #tpu.memory_space<vmem>>, vector<1x64xf32>
    %54 = vector.broadcast %53 : vector<1x64xf32> to vector<16x64xf32>
    %55 = arith.addf %52, %54 : vector<16x64xf32>
    %cst_35 = arith.constant 0.166666672 : f32
    %56 = vector.broadcast %cst_35 : f32 to vector<16x64xf32>
    %57 = arith.mulf %55, %56 : vector<16x64xf32>
    %cst_36 = arith.constant 5.000000e-01 : f32
    %58 = vector.broadcast %cst_36 : f32 to vector<16x64xf32>
    %59 = arith.addf %57, %58 : vector<16x64xf32>
    %cst_37 = arith.constant 0.000000e+00 : f32
    %cst_38 = arith.constant 1.000000e+00 : f32
    %60 = vector.broadcast %cst_37 : f32 to vector<16x64xf32>
    %61 = arith.maximumf %60, %59 : vector<16x64xf32>
    %62 = vector.broadcast %cst_38 : f32 to vector<16x64xf32>
    %63 = arith.minimumf %62, %61 : vector<16x64xf32>
    %64 = arith.mulf %29, %63 : vector<16x64xf32>
    %65 = arith.mulf %38, %63 : vector<16x64xf32>
    %66 = arith.truncf %64 : vector<16x64xf32> to vector<16x64xbf16>
    %c0_39 = arith.constant 0 : index
    %c0_40 = arith.constant 0 : index
    %67 = vector.load %arg16[%c0_39, %c0_40] : memref<64x32xbf16, #tpu.memory_space<vmem>>, vector<64x32xbf16>
    %cst_41 = arith.constant dense<0.000000e+00> : vector<16x32xf32>
    %68 = tpu.matmul %66, %67, %cst_41 {dimension_numbers = #tpu.dot_dimension_numbers<[1], [0], [0], [1], [0, 0, 1, 1], [], []>} : vector<16x64xbf16>, vector<64x32xbf16>, vector<16x32xf32> -> vector<16x32xf32>
    %c0_42 = arith.constant 0 : index
    %c0_43 = arith.constant 0 : index
    %69 = vector.load %arg17[%c0_42, %c0_43] : memref<1x32xf32, #tpu.memory_space<vmem>>, vector<1x32xf32>
    %70 = vector.broadcast %69 : vector<1x32xf32> to vector<16x32xf32>
    %71 = arith.addf %68, %70 : vector<16x32xf32>
    %72 = vector.extract_strided_slice %5 {offsets = [0, 0], sizes = [16, 32], strides = [1, 1]} : vector<32x32xf32> to vector<16x32xf32>
    %73 = arith.addf %71, %72 : vector<16x32xf32>
    %74 = arith.truncf %65 : vector<16x64xf32> to vector<16x64xbf16>
    %c0_44 = arith.constant 0 : index
    %c0_45 = arith.constant 0 : index
    %75 = vector.load %arg16[%c0_44, %c0_45] : memref<64x32xbf16, #tpu.memory_space<vmem>>, vector<64x32xbf16>
    %cst_46 = arith.constant dense<0.000000e+00> : vector<16x32xf32>
    %76 = tpu.matmul %74, %75, %cst_46 {dimension_numbers = #tpu.dot_dimension_numbers<[1], [0], [0], [1], [0, 0, 1, 1], [], []>} : vector<16x64xbf16>, vector<64x32xbf16>, vector<16x32xf32> -> vector<16x32xf32>
    %c0_47 = arith.constant 0 : index
    %c0_48 = arith.constant 0 : index
    %77 = vector.load %arg17[%c0_47, %c0_48] : memref<1x32xf32, #tpu.memory_space<vmem>>, vector<1x32xf32>
    %78 = vector.broadcast %77 : vector<1x32xf32> to vector<16x32xf32>
    %79 = arith.addf %76, %78 : vector<16x32xf32>
    %80 = vector.extract_strided_slice %5 {offsets = [16, 0], sizes = [16, 32], strides = [1, 1]} : vector<32x32xf32> to vector<16x32xf32>
    %81 = arith.addf %79, %80 : vector<16x32xf32>
    %82 = arith.truncf %73 : vector<16x32xf32> to vector<16x32xbf16>
    %c0_49 = arith.constant 0 : index
    %c0_50 = arith.constant 0 : index
    %83 = vector.load %arg18[%c0_49, %c0_50] : memref<32x128xbf16, #tpu.memory_space<vmem>>, vector<32x128xbf16>
    %cst_51 = arith.constant dense<0.000000e+00> : vector<16x128xf32>
    %84 = tpu.matmul %82, %83, %cst_51 {dimension_numbers = #tpu.dot_dimension_numbers<[1], [0], [0], [1], [0, 0, 1, 1], [], []>} : vector<16x32xbf16>, vector<32x128xbf16>, vector<16x128xf32> -> vector<16x128xf32>
    %c0_52 = arith.constant 0 : index
    %c0_53 = arith.constant 0 : index
    %85 = vector.load %arg19[%c0_52, %c0_53] : memref<1x128xf32, #tpu.memory_space<vmem>>, vector<1x128xf32>
    %86 = vector.broadcast %85 : vector<1x128xf32> to vector<16x128xf32>
    %87 = arith.addf %84, %86 : vector<16x128xf32>
    %cst_54 = arith.constant 0.166666672 : f32
    %88 = vector.broadcast %cst_54 : f32 to vector<16x128xf32>
    %89 = arith.mulf %87, %88 : vector<16x128xf32>
    %cst_55 = arith.constant 5.000000e-01 : f32
    %90 = vector.broadcast %cst_55 : f32 to vector<16x128xf32>
    %91 = arith.addf %89, %90 : vector<16x128xf32>
    %cst_56 = arith.constant 0.000000e+00 : f32
    %cst_57 = arith.constant 1.000000e+00 : f32
    %92 = vector.broadcast %cst_56 : f32 to vector<16x128xf32>
    %93 = arith.maximumf %92, %91 : vector<16x128xf32>
    %94 = vector.broadcast %cst_57 : f32 to vector<16x128xf32>
    %95 = arith.minimumf %94, %93 : vector<16x128xf32>
    %96 = arith.mulf %87, %95 : vector<16x128xf32>
    %97 = arith.truncf %81 : vector<16x32xf32> to vector<16x32xbf16>
    %c0_58 = arith.constant 0 : index
    %c0_59 = arith.constant 0 : index
    %98 = vector.load %arg18[%c0_58, %c0_59] : memref<32x128xbf16, #tpu.memory_space<vmem>>, vector<32x128xbf16>
    %cst_60 = arith.constant dense<0.000000e+00> : vector<16x128xf32>
    %99 = tpu.matmul %97, %98, %cst_60 {dimension_numbers = #tpu.dot_dimension_numbers<[1], [0], [0], [1], [0, 0, 1, 1], [], []>} : vector<16x32xbf16>, vector<32x128xbf16>, vector<16x128xf32> -> vector<16x128xf32>
    %c0_61 = arith.constant 0 : index
    %c0_62 = arith.constant 0 : index
    %100 = vector.load %arg19[%c0_61, %c0_62] : memref<1x128xf32, #tpu.memory_space<vmem>>, vector<1x128xf32>
    %101 = vector.broadcast %100 : vector<1x128xf32> to vector<16x128xf32>
    %102 = arith.addf %99, %101 : vector<16x128xf32>
    %cst_63 = arith.constant 0.166666672 : f32
    %103 = vector.broadcast %cst_63 : f32 to vector<16x128xf32>
    %104 = arith.mulf %102, %103 : vector<16x128xf32>
    %cst_64 = arith.constant 5.000000e-01 : f32
    %105 = vector.broadcast %cst_64 : f32 to vector<16x128xf32>
    %106 = arith.addf %104, %105 : vector<16x128xf32>
    %cst_65 = arith.constant 0.000000e+00 : f32
    %cst_66 = arith.constant 1.000000e+00 : f32
    %107 = vector.broadcast %cst_65 : f32 to vector<16x128xf32>
    %108 = arith.maximumf %107, %106 : vector<16x128xf32>
    %109 = vector.broadcast %cst_66 : f32 to vector<16x128xf32>
    %110 = arith.minimumf %109, %108 : vector<16x128xf32>
    %111 = arith.mulf %102, %110 : vector<16x128xf32>
    %c0_67 = arith.constant 0 : index
    %c0_68 = arith.constant 0 : index
    %112 = vector.load %arg20[%c0_67, %c0_68] : memref<1x128xf32, #tpu.memory_space<vmem>>, vector<1x128xf32>
    %c0_69 = arith.constant 0 : index
    %c0_70 = arith.constant 0 : index
    %113 = vector.load %arg21[%c0_69, %c0_70] : memref<1x128xf32, #tpu.memory_space<vmem>>, vector<1x128xf32>
    %c0_71 = arith.constant 0 : index
    %c0_72 = arith.constant 0 : index
    %114 = vector.load %arg22[%c0_71, %c0_72] : memref<1x128xf32, #tpu.memory_space<vmem>>, vector<1x128xf32>
    %c0_73 = arith.constant 0 : index
    %c0_74 = arith.constant 0 : index
    %115 = vector.load %arg23[%c0_73, %c0_74] : memref<1x128xf32, #tpu.memory_space<vmem>>, vector<1x128xf32>
    %c0_75 = arith.constant 0 : index
    %c0_76 = arith.constant 0 : index
    %116 = vector.load %arg24[%c0_75, %c0_76] : memref<1x128xf32, #tpu.memory_space<vmem>>, vector<1x128xf32>
    %117 = vector.broadcast %112 : vector<1x128xf32> to vector<16x128xf32>
    %118 = arith.mulf %117, %96 : vector<16x128xf32>
    %119 = vector.broadcast %113 : vector<1x128xf32> to vector<16x128xf32>
    %120 = arith.mulf %119, %111 : vector<16x128xf32>
    %121 = arith.addf %118, %120 : vector<16x128xf32>
    %122 = vector.broadcast %116 : vector<1x128xf32> to vector<16x128xf32>
    %123 = arith.addf %121, %122 : vector<16x128xf32>
    %cst_77 = arith.constant 0.166666672 : f32
    %124 = vector.broadcast %cst_77 : f32 to vector<16x128xf32>
    %125 = arith.mulf %123, %124 : vector<16x128xf32>
    %cst_78 = arith.constant 5.000000e-01 : f32
    %126 = vector.broadcast %cst_78 : f32 to vector<16x128xf32>
    %127 = arith.addf %125, %126 : vector<16x128xf32>
    %cst_79 = arith.constant 0.000000e+00 : f32
    %cst_80 = arith.constant 1.000000e+00 : f32
    %128 = vector.broadcast %cst_79 : f32 to vector<16x128xf32>
    %129 = arith.maximumf %128, %127 : vector<16x128xf32>
    %130 = vector.broadcast %cst_80 : f32 to vector<16x128xf32>
    %131 = arith.minimumf %130, %129 : vector<16x128xf32>
    %132 = arith.mulf %123, %131 : vector<16x128xf32>
    %133 = vector.broadcast %114 : vector<1x128xf32> to vector<16x128xf32>
    %134 = arith.mulf %133, %96 : vector<16x128xf32>
    %135 = vector.broadcast %115 : vector<1x128xf32> to vector<16x128xf32>
    %136 = arith.mulf %135, %111 : vector<16x128xf32>
    %137 = arith.addf %134, %136 : vector<16x128xf32>
    %138 = vector.broadcast %116 : vector<1x128xf32> to vector<16x128xf32>
    %139 = arith.addf %137, %138 : vector<16x128xf32>
    %cst_81 = arith.constant 0.166666672 : f32
    %140 = vector.broadcast %cst_81 : f32 to vector<16x128xf32>
    %141 = arith.mulf %139, %140 : vector<16x128xf32>
    %cst_82 = arith.constant 5.000000e-01 : f32
    %142 = vector.broadcast %cst_82 : f32 to vector<16x128xf32>
    %143 = arith.addf %141, %142 : vector<16x128xf32>
    %cst_83 = arith.constant 0.000000e+00 : f32
    %cst_84 = arith.constant 1.000000e+00 : f32
    %144 = vector.broadcast %cst_83 : f32 to vector<16x128xf32>
    %145 = arith.maximumf %144, %143 : vector<16x128xf32>
    %146 = vector.broadcast %cst_84 : f32 to vector<16x128xf32>
    %147 = arith.minimumf %146, %145 : vector<16x128xf32>
    %148 = arith.mulf %139, %147 : vector<16x128xf32>
    %149 = arith.maximumf %132, %148 : vector<16x128xf32>
    %150 = arith.truncf %149 : vector<16x128xf32> to vector<16x128xbf16>
    %c0_85 = arith.constant 0 : index
    %c0_86 = arith.constant 0 : index
    %151 = vector.load %arg25[%c0_85, %c0_86] : memref<128x32xbf16, #tpu.memory_space<vmem>>, vector<128x32xbf16>
    %cst_87 = arith.constant dense<0.000000e+00> : vector<16x32xf32>
    %152 = tpu.matmul %150, %151, %cst_87 {dimension_numbers = #tpu.dot_dimension_numbers<[1], [0], [0], [1], [0, 0, 1, 1], [], []>} : vector<16x128xbf16>, vector<128x32xbf16>, vector<16x32xf32> -> vector<16x32xf32>
    %c0_88 = arith.constant 0 : index
    %c0_89 = arith.constant 0 : index
    %153 = vector.load %arg26[%c0_88, %c0_89] : memref<1x32xf32, #tpu.memory_space<vmem>>, vector<1x32xf32>
    %154 = vector.broadcast %153 : vector<1x32xf32> to vector<16x32xf32>
    %155 = arith.addf %152, %154 : vector<16x32xf32>
    %cst_90 = arith.constant 0.000000e+00 : f32
    %156 = vector.broadcast %cst_90 : f32 to vector<16x32xf32>
    %157 = arith.maximumf %155, %156 : vector<16x32xf32>
    %158 = arith.truncf %157 : vector<16x32xf32> to vector<16x32xbf16>
    %c0_91 = arith.constant 0 : index
    %c0_92 = arith.constant 0 : index
    %159 = vector.load %arg27[%c0_91, %c0_92] : memref<32x128xbf16, #tpu.memory_space<vmem>>, vector<32x128xbf16>
    %cst_93 = arith.constant dense<0.000000e+00> : vector<16x128xf32>
    %160 = tpu.matmul %158, %159, %cst_93 {dimension_numbers = #tpu.dot_dimension_numbers<[1], [0], [0], [1], [0, 0, 1, 1], [], []>} : vector<16x32xbf16>, vector<32x128xbf16>, vector<16x128xf32> -> vector<16x128xf32>
    %c0_94 = arith.constant 0 : index
    %c0_95 = arith.constant 0 : index
    %161 = vector.load %arg28[%c0_94, %c0_95] : memref<1x128xf32, #tpu.memory_space<vmem>>, vector<1x128xf32>
    %162 = vector.broadcast %161 : vector<1x128xf32> to vector<16x128xf32>
    %163 = arith.addf %160, %162 : vector<16x128xf32>
    %cst_96 = arith.constant 0.166666672 : f32
    %164 = vector.broadcast %cst_96 : f32 to vector<16x128xf32>
    %165 = arith.mulf %163, %164 : vector<16x128xf32>
    %cst_97 = arith.constant 5.000000e-01 : f32
    %166 = vector.broadcast %cst_97 : f32 to vector<16x128xf32>
    %167 = arith.addf %165, %166 : vector<16x128xf32>
    %cst_98 = arith.constant 0.000000e+00 : f32
    %cst_99 = arith.constant 1.000000e+00 : f32
    %168 = vector.broadcast %cst_98 : f32 to vector<16x128xf32>
    %169 = arith.maximumf %168, %167 : vector<16x128xf32>
    %170 = vector.broadcast %cst_99 : f32 to vector<16x128xf32>
    %171 = arith.minimumf %170, %169 : vector<16x128xf32>
    %172 = arith.mulf %132, %171 : vector<16x128xf32>
    %173 = arith.mulf %148, %171 : vector<16x128xf32>
    %174 = arith.truncf %172 : vector<16x128xf32> to vector<16x128xbf16>
    %c0_100 = arith.constant 0 : index
    %c0_101 = arith.constant 0 : index
    %175 = vector.load %arg29[%c0_100, %c0_101] : memref<128x64xbf16, #tpu.memory_space<vmem>>, vector<128x64xbf16>
    %cst_102 = arith.constant dense<0.000000e+00> : vector<16x64xf32>
    %176 = tpu.matmul %174, %175, %cst_102 {dimension_numbers = #tpu.dot_dimension_numbers<[1], [0], [0], [1], [0, 0, 1, 1], [], []>} : vector<16x128xbf16>, vector<128x64xbf16>, vector<16x64xf32> -> vector<16x64xf32>
    %c0_103 = arith.constant 0 : index
    %c0_104 = arith.constant 0 : index
    %177 = vector.load %arg30[%c0_103, %c0_104] : memref<1x64xf32, #tpu.memory_space<vmem>>, vector<1x64xf32>
    %178 = vector.broadcast %177 : vector<1x64xf32> to vector<16x64xf32>
    %179 = arith.addf %176, %178 : vector<16x64xf32>
    %180 = tpu.concatenate %73, %73 in 1 : vector<16x32xf32>, vector<16x32xf32> -> vector<16x64xf32>
    %181 = arith.addf %179, %180 : vector<16x64xf32>
    %182 = arith.truncf %173 : vector<16x128xf32> to vector<16x128xbf16>
    %c0_105 = arith.constant 0 : index
    %c0_106 = arith.constant 0 : index
    %183 = vector.load %arg29[%c0_105, %c0_106] : memref<128x64xbf16, #tpu.memory_space<vmem>>, vector<128x64xbf16>
    %cst_107 = arith.constant dense<0.000000e+00> : vector<16x64xf32>
    %184 = tpu.matmul %182, %183, %cst_107 {dimension_numbers = #tpu.dot_dimension_numbers<[1], [0], [0], [1], [0, 0, 1, 1], [], []>} : vector<16x128xbf16>, vector<128x64xbf16>, vector<16x64xf32> -> vector<16x64xf32>
    %c0_108 = arith.constant 0 : index
    %c0_109 = arith.constant 0 : index
    %185 = vector.load %arg30[%c0_108, %c0_109] : memref<1x64xf32, #tpu.memory_space<vmem>>, vector<1x64xf32>
    %186 = vector.broadcast %185 : vector<1x64xf32> to vector<16x64xf32>
    %187 = arith.addf %184, %186 : vector<16x64xf32>
    %188 = tpu.concatenate %81, %81 in 1 : vector<16x32xf32>, vector<16x32xf32> -> vector<16x64xf32>
    %189 = arith.addf %187, %188 : vector<16x64xf32>
    %190 = arith.truncf %181 : vector<16x64xf32> to vector<16x64xbf16>
    %c0_110 = arith.constant 0 : index
    %c0_111 = arith.constant 0 : index
    %191 = vector.load %arg31[%c0_110, %c0_111] : memref<64x128xbf16, #tpu.memory_space<vmem>>, vector<64x128xbf16>
    %cst_112 = arith.constant dense<0.000000e+00> : vector<16x128xf32>
    %192 = tpu.matmul %190, %191, %cst_112 {dimension_numbers = #tpu.dot_dimension_numbers<[1], [0], [0], [1], [0, 0, 1, 1], [], []>} : vector<16x64xbf16>, vector<64x128xbf16>, vector<16x128xf32> -> vector<16x128xf32>
    %193 = arith.truncf %189 : vector<16x64xf32> to vector<16x64xbf16>
    %c0_113 = arith.constant 0 : index
    %c0_114 = arith.constant 0 : index
    %194 = vector.load %arg32[%c0_113, %c0_114] : memref<64x128xbf16, #tpu.memory_space<vmem>>, vector<64x128xbf16>
    %cst_115 = arith.constant dense<0.000000e+00> : vector<16x128xf32>
    %195 = tpu.matmul %193, %194, %cst_115 {dimension_numbers = #tpu.dot_dimension_numbers<[1], [0], [0], [1], [0, 0, 1, 1], [], []>} : vector<16x64xbf16>, vector<64x128xbf16>, vector<16x128xf32> -> vector<16x128xf32>
    %196 = arith.addf %192, %195 : vector<16x128xf32>
    %c0_116 = arith.constant 0 : index
    %c0_117 = arith.constant 0 : index
    %197 = vector.load %arg33[%c0_116, %c0_117] : memref<1x128xf32, #tpu.memory_space<vmem>>, vector<1x128xf32>
    %198 = vector.broadcast %197 : vector<1x128xf32> to vector<16x128xf32>
    %199 = arith.addf %196, %198 : vector<16x128xf32>
    %cst_118 = arith.constant 0.000000e+00 : f32
    %200 = vector.broadcast %cst_118 : f32 to vector<16x128xf32>
    %201 = arith.maximumf %199, %200 : vector<16x128xf32>
    %202 = arith.truncf %201 : vector<16x128xf32> to vector<16x128xbf16>
    %c0_119 = arith.constant 0 : index
    %c0_120 = arith.constant 0 : index
    %203 = vector.load %arg34[%c0_119, %c0_120] : memref<128x128xbf16, #tpu.memory_space<vmem>>, vector<128x128xbf16>
    %cst_121 = arith.constant dense<0.000000e+00> : vector<16x128xf32>
    %204 = tpu.matmul %202, %203, %cst_121 {dimension_numbers = #tpu.dot_dimension_numbers<[1], [0], [0], [1], [0, 0, 1, 1], [], []>} : vector<16x128xbf16>, vector<128x128xbf16>, vector<16x128xf32> -> vector<16x128xf32>
    %c0_122 = arith.constant 0 : index
    %c0_123 = arith.constant 0 : index
    %205 = vector.load %arg35[%c0_122, %c0_123] : memref<1x128xf32, #tpu.memory_space<vmem>>, vector<1x128xf32>
    %206 = vector.broadcast %205 : vector<1x128xf32> to vector<16x128xf32>
    %207 = arith.addf %204, %206 : vector<16x128xf32>
    %c0_124 = arith.constant 0 : index
    %c0_125 = arith.constant 0 : index
    %208 = vector.load %arg2[%c0_124, %c0_125] : memref<16x128xbf16, #tpu.memory_space<vmem>>, vector<16x128xbf16>
    %cst_126 = arith.constant 5.000000e-01 : bf16
    %209 = vector.broadcast %cst_126 : bf16 to vector<16x128xbf16>
    %210 = arith.cmpf ogt, %208, %209 : vector<16x128xbf16>
    %cst_127 = arith.constant -1.000000e+08 : f32
    %211 = vector.broadcast %cst_127 : f32 to vector<16x128xf32>
    %212 = arith.select %210, %207, %211 : vector<16x128xi1>, vector<16x128xf32>
    %cst_128 = arith.constant dense<0xFF800000> : vector<16xf32>
    %213 = vector.multi_reduction <maximumf>, %212, %cst_128 [1] : vector<16x128xf32> to vector<16xf32>
    %214 = vector.shape_cast %213 : vector<16xf32> to vector<16x1xf32>
    %215 = vector.broadcast %214 : vector<16x1xf32> to vector<16x128xf32>
    %216 = arith.subf %212, %215 : vector<16x128xf32>
    %217 = math.exp %216 : vector<16x128xf32>
    %cst_129 = arith.constant dense<0.000000e+00> : vector<16xf32>
    %218 = vector.multi_reduction <add>, %217, %cst_129 [1] : vector<16x128xf32> to vector<16xf32>
    %219 = vector.shape_cast %218 : vector<16xf32> to vector<16x1xf32>
    %220 = math.log %219 : vector<16x1xf32>
    %221 = arith.addf %220, %214 : vector<16x1xf32>
    %222 = vector.broadcast %221 : vector<16x1xf32> to vector<16x128xf32>
    %223 = arith.subf %212, %222 : vector<16x128xf32>
    %224 = tpu.iota {dimensions = array<i32: 1>} : vector<16x128xi32>
    %c40_i32 = arith.constant 40 : i32
    %225 = vector.broadcast %c40_i32 : i32 to vector<16x128xi32>
    %226 = arith.cmpi slt, %224, %225 : vector<16x128xi32>
    %227 = math.tanh %207 : vector<16x128xf32>
    %228 = arith.select %226, %223, %227 : vector<16x128xi1>, vector<16x128xf32>
    %c0_130 = arith.constant 0 : index
    %c0_131 = arith.constant 0 : index
    %229 = vector.load %arg36[%c0_130, %c0_131] : memref<16x128xf32, #tpu.memory_space<vmem>>, vector<16x128xf32>
    tpu.vector_store %arg36[%c0_130, %c0_131], %228 {strides = array<i32>} : memref<16x128xf32, #tpu.memory_space<vmem>>, vector<16x128xf32>,
    return
  }
  func.func @transform_0(%arg0: i32) -> (i32, i32) {
    %c0_i32 = arith.constant 0 : i32
    %c0_i32_0 = arith.constant 0 : i32
    return %arg0, %c0_i32 : i32, i32
  }
  func.func @transform_1(%arg0: i32) -> (i32, i32) {
    %c0_i32 = arith.constant 0 : i32
    %c0_i32_0 = arith.constant 0 : i32
    return %arg0, %c0_i32 : i32, i32
  }
  func.func @transform_2(%arg0: i32) -> (i32, i32) {
    %c0_i32 = arith.constant 0 : i32
    %c0_i32_0 = arith.constant 0 : i32
    %c0_i32_1 = arith.constant 0 : i32
    return %c0_i32, %c0_i32_0 : i32, i32
  }
  func.func @transform_3(%arg0: i32) -> (i32, i32) {
    %c0_i32 = arith.constant 0 : i32
    %c0_i32_0 = arith.constant 0 : i32
    %c0_i32_1 = arith.constant 0 : i32
    return %c0_i32, %c0_i32_0 : i32, i32
  }
  func.func @transform_4(%arg0: i32) -> (i32, i32) {
    %c0_i32 = arith.constant 0 : i32
    %c0_i32_0 = arith.constant 0 : i32
    %c0_i32_1 = arith.constant 0 : i32
    return %c0_i32, %c0_i32_0 : i32, i32
  }
  func.func @transform_5(%arg0: i32) -> (i32, i32) {
    %c0_i32 = arith.constant 0 : i32
    %c0_i32_0 = arith.constant 0 : i32
    %c0_i32_1 = arith.constant 0 : i32
    return %c0_i32, %c0_i32_0 : i32, i32
  }
  func.func @transform_6(%arg0: i32) -> (i32, i32) {
    %c0_i32 = arith.constant 0 : i32
    %c0_i32_0 = arith.constant 0 : i32
    %c0_i32_1 = arith.constant 0 : i32
    return %c0_i32, %c0_i32_0 : i32, i32
  }
  func.func @transform_7(%arg0: i32) -> (i32, i32) {
    %c0_i32 = arith.constant 0 : i32
    %c0_i32_0 = arith.constant 0 : i32
    %c0_i32_1 = arith.constant 0 : i32
    return %c0_i32, %c0_i32_0 : i32, i32
  }
  func.func @transform_8(%arg0: i32) -> (i32, i32) {
    %c0_i32 = arith.constant 0 : i32
    %c0_i32_0 = arith.constant 0 : i32
    %c0_i32_1 = arith.constant 0 : i32
    return %c0_i32, %c0_i32_0 : i32, i32
  }
  func.func @transform_9(%arg0: i32) -> (i32, i32) {
    %c0_i32 = arith.constant 0 : i32
    %c0_i32_0 = arith.constant 0 : i32
    %c0_i32_1 = arith.constant 0 : i32
    return %c0_i32, %c0_i32_0 : i32, i32
  }
  func.func @transform_10(%arg0: i32) -> (i32, i32) {
    %c0_i32 = arith.constant 0 : i32
    %c0_i32_0 = arith.constant 0 : i32
    %c0_i32_1 = arith.constant 0 : i32
    return %c0_i32, %c0_i32_0 : i32, i32
  }
  func.func @transform_11(%arg0: i32) -> (i32, i32) {
    %c0_i32 = arith.constant 0 : i32
    %c0_i32_0 = arith.constant 0 : i32
    %c0_i32_1 = arith.constant 0 : i32
    return %c0_i32, %c0_i32_0 : i32, i32
  }
  func.func @transform_12(%arg0: i32) -> (i32, i32) {
    %c0_i32 = arith.constant 0 : i32
    %c0_i32_0 = arith.constant 0 : i32
    %c0_i32_1 = arith.constant 0 : i32
    return %c0_i32, %c0_i32_0 : i32, i32
  }
  func.func @transform_13(%arg0: i32) -> (i32, i32) {
    %c0_i32 = arith.constant 0 : i32
    %c0_i32_0 = arith.constant 0 : i32
    %c0_i32_1 = arith.constant 0 : i32
    return %c0_i32, %c0_i32_0 : i32, i32
  }
  func.func @transform_14(%arg0: i32) -> (i32, i32) {
    %c0_i32 = arith.constant 0 : i32
    %c0_i32_0 = arith.constant 0 : i32
    %c0_i32_1 = arith.constant 0 : i32
    return %c0_i32, %c0_i32_0 : i32, i32
  }
  func.func @transform_15(%arg0: i32) -> (i32, i32) {
    %c0_i32 = arith.constant 0 : i32
    %c0_i32_0 = arith.constant 0 : i32
    %c0_i32_1 = arith.constant 0 : i32
    return %c0_i32, %c0_i32_0 : i32, i32
  }
  func.func @transform_16(%arg0: i32) -> (i32, i32) {
    %c0_i32 = arith.constant 0 : i32
    %c0_i32_0 = arith.constant 0 : i32
    %c0_i32_1 = arith.constant 0 : i32
    return %c0_i32, %c0_i32_0 : i32, i32
  }
  func.func @transform_17(%arg0: i32) -> (i32, i32) {
    %c0_i32 = arith.constant 0 : i32
    %c0_i32_0 = arith.constant 0 : i32
    %c0_i32_1 = arith.constant 0 : i32
    return %c0_i32, %c0_i32_0 : i32, i32
  }
  func.func @transform_18(%arg0: i32) -> (i32, i32) {
    %c0_i32 = arith.constant 0 : i32
    %c0_i32_0 = arith.constant 0 : i32
    %c0_i32_1 = arith.constant 0 : i32
    return %c0_i32, %c0_i32_0 : i32, i32
  }
  func.func @transform_19(%arg0: i32) -> (i32, i32) {
    %c0_i32 = arith.constant 0 : i32
    %c0_i32_0 = arith.constant 0 : i32
    %c0_i32_1 = arith.constant 0 : i32
    return %c0_i32, %c0_i32_0 : i32, i32
  }
  func.func @transform_20(%arg0: i32) -> (i32, i32) {
    %c0_i32 = arith.constant 0 : i32
    %c0_i32_0 = arith.constant 0 : i32
    %c0_i32_1 = arith.constant 0 : i32
    return %c0_i32, %c0_i32_0 : i32, i32
  }
  func.func @transform_21(%arg0: i32) -> (i32, i32) {
    %c0_i32 = arith.constant 0 : i32
    %c0_i32_0 = arith.constant 0 : i32
    %c0_i32_1 = arith.constant 0 : i32
    return %c0_i32, %c0_i32_0 : i32, i32
  }
  func.func @transform_22(%arg0: i32) -> (i32, i32) {
    %c0_i32 = arith.constant 0 : i32
    %c0_i32_0 = arith.constant 0 : i32
    %c0_i32_1 = arith.constant 0 : i32
    return %c0_i32, %c0_i32_0 : i32, i32
  }
  func.func @transform_23(%arg0: i32) -> (i32, i32) {
    %c0_i32 = arith.constant 0 : i32
    %c0_i32_0 = arith.constant 0 : i32
    %c0_i32_1 = arith.constant 0 : i32
    return %c0_i32, %c0_i32_0 : i32, i32
  }
  func.func @transform_24(%arg0: i32) -> (i32, i32) {
    %c0_i32 = arith.constant 0 : i32
    %c0_i32_0 = arith.constant 0 : i32
    %c0_i32_1 = arith.constant 0 : i32
    return %c0_i32, %c0_i32_0 : i32, i32
  }
  func.func @transform_25(%arg0: i32) -> (i32, i32) {
    %c0_i32 = arith.constant 0 : i32
    %c0_i32_0 = arith.constant 0 : i32
    %c0_i32_1 = arith.constant 0 : i32
    return %c0_i32, %c0_i32_0 : i32, i32
  }
  func.func @transform_26(%arg0: i32) -> (i32, i32) {
    %c0_i32 = arith.constant 0 : i32
    %c0_i32_0 = arith.constant 0 : i32
    %c0_i32_1 = arith.constant 0 : i32
    return %c0_i32, %c0_i32_0 : i32, i32
  }
  func.func @transform_27(%arg0: i32) -> (i32, i32) {
    %c0_i32 = arith.constant 0 : i32
    %c0_i32_0 = arith.constant 0 : i32
    %c0_i32_1 = arith.constant 0 : i32
    return %c0_i32, %c0_i32_0 : i32, i32
  }
  func.func @transform_28(%arg0: i32) -> (i32, i32) {
    %c0_i32 = arith.constant 0 : i32
    %c0_i32_0 = arith.constant 0 : i32
    %c0_i32_1 = arith.constant 0 : i32
    return %c0_i32, %c0_i32_0 : i32, i32
  }
  func.func @transform_29(%arg0: i32) -> (i32, i32) {
    %c0_i32 = arith.constant 0 : i32
    %c0_i32_0 = arith.constant 0 : i32
    %c0_i32_1 = arith.constant 0 : i32
    return %c0_i32, %c0_i32_0 : i32, i32
  }
  func.func @transform_30(%arg0: i32) -> (i32, i32) {
    %c0_i32 = arith.constant 0 : i32
    %c0_i32_0 = arith.constant 0 : i32
    %c0_i32_1 = arith.constant 0 : i32
    return %c0_i32, %c0_i32_0 : i32, i32
  }
  func.func @transform_31(%arg0: i32) -> (i32, i32) {
    %c0_i32 = arith.constant 0 : i32
    %c0_i32_0 = arith.constant 0 : i32
    %c0_i32_1 = arith.constant 0 : i32
    return %c0_i32, %c0_i32_0 : i32, i32
  }
  func.func @transform_32(%arg0: i32) -> (i32, i32) {
    %c0_i32 = arith.constant 0 : i32
    %c0_i32_0 = arith.constant 0 : i32
    %c0_i32_1 = arith.constant 0 : i32
    return %c0_i32, %c0_i32_0 : i32, i32
  }
  func.func @transform_33(%arg0: i32) -> (i32, i32) {
    %c0_i32 = arith.constant 0 : i32
    %c0_i32_0 = arith.constant 0 : i32
    %c0_i32_1 = arith.constant 0 : i32
    return %c0_i32, %c0_i32_0 : i32, i32
  }
  func.func @transform_34(%arg0: i32) -> (i32, i32) {
    %c0_i32 = arith.constant 0 : i32
    %c0_i32_0 = arith.constant 0 : i32
    %c0_i32_1 = arith.constant 0 : i32
    return %c0_i32, %c0_i32_0 : i32, i32
  }
  func.func @transform_35(%arg0: i32) -> (i32, i32) {
    %c0_i32 = arith.constant 0 : i32
    %c0_i32_0 = arith.constant 0 : i32
    return %arg0, %c0_i32 : i32, i32
  }
}

</mosaic_0001>

<bundles_post_ra>
// kernel: tpu_custom_call.1
= control target key start
LH: loop header
LB: loop body
LE: loop exit
PB: predicated region body
PF: predicated region fallthrough
CT: control target
= control target key end

     0   :  { %s3222_s6 = smov 1   ;;  %s3223_s10 = smov 2   ;;  %s3787_s0 = inlined_call_operand.smem [shape: u32[36], index: -1, kind: input, shape index: {}] }
   0x1   :  { %s3272_s5 = sld [smem:[%s3787_s0]]   ;;  %s3224_s14 = smov 3  }
   0x2   :  { %s3277_s9 = sld [smem:[%s3787_s0 + %s3222_s6]]   ;;  %s3225_s18 = smov 4  }
   0x3   :  { %s3282_s13 = sld [smem:[%s3787_s0 + %s3223_s10]]   ;;  %s3226_s22 = smov 5  }
   0x4   :  { %s3287_s17 = sld [smem:[%s3787_s0 + %s3224_s14]]   ;;  %s3227_s26 = smov 6  }
   0x5   :  { %s3292_s21 = sld [smem:[%s3787_s0 + %s3225_s18]]   ;;  %s3228_s30 = smov 7  }
   0x6   :  { %s3297_s25 = sld [smem:[%s3787_s0 + %s3226_s22]]   ;;  %s3229_s4 = smov 8  }
   0x7   :  { %3799 = sst [smem:[#allocation5_spill]] %s3272_s5  ;;  %s3230_s10 = smov 9  }
   0x8   :  { %3800 = sst [smem:[#allocation6_spill]] %s3277_s9  ;;  %s3231_s15 = smov 10  }
   0x9   :  { %s3302_s29 = sld [smem:[%s3787_s0 + %s3227_s26]]   ;;  %s3232_s20 = smov 11  }
   0xa   :  { %s3307_s3 = sld [smem:[%s3787_s0 + %s3228_s30]]   ;;  %s3233_s26 = smov 12  }
   0xb   :  { %s3312_s8 = sld [smem:[%s3787_s0 + %s3229_s4]]   ;;  %s3234_s1 = smov 13  }
   0xc   :  { %s3317_s14 = sld [smem:[%s3787_s0 + %s3230_s10]]   ;;  %s3235_s7 = smov 14  }
   0xd   :  { %s3322_s19 = sld [smem:[%s3787_s0 + %s3231_s15]]   ;;  %s3236_s15 = smov 15  }
   0xe   :  { %s3327_s24 = sld [smem:[%s3787_s0 + %s3232_s20]]   ;;  %s3237_s22 = smov 16  }
   0xf   :  { %s3332_s30 = sld [smem:[%s3787_s0 + %s3233_s26]]   ;;  %s3238_s28 = smov 17  }
  0x10   :  { %3801 = sst [smem:[#allocation7_spill]] %s3307_s3 }
  0x11   :  { %3802 = sst [smem:[#allocation8_spill]] %s3312_s8 }
  0x12   :  { %s3337_s6 = sld [smem:[%s3787_s0 + %s3234_s1]]  }
  0x13   :  { %s3342_s12 = sld [smem:[%s3787_s0 + %s3235_s7]]   ;;  %s3239_s7 = smov 18  }
  0x14   :  { %s3347_s20 = sld [smem:[%s3787_s0 + %s3236_s15]]   ;;  %s3240_s15 = smov 19  }
  0x15   :  { %s3352_s27 = sld [smem:[%s3787_s0 + %s3237_s22]]   ;;  %s3241_s22 = smov 20  }
  0x16   :  { %s3357_s4 = sld [smem:[%s3787_s0 + %s3238_s28]]   ;;  %s3242_s28 = smov 21  }
  0x17   :  { %s3362_s9 = sld [smem:[%s3787_s0 + %s3239_s7]]   ;;  %s3243_s7 = smov 22  }
  0x18   :  { %3803 = sst [smem:[#allocation9_spill]] %s3337_s6 }
  0x19   :  { %3804 = sst [smem:[#allocation10_spill]] %s3342_s12 }
  0x1a   :  { %s3367_s12 = sld [smem:[%s3787_s0 + %s3240_s15]]   ;;  %s3244_s15 = smov 23  }
  0x1b   :  { %3805 = sst [smem:[#allocation11_spill]] %s3352_s27 }
  0x1c   :  { %3806 = sst [smem:[#allocation12_spill]] %s3357_s4 }
  0x1d   :  { %3807 = sst [smem:[#allocation13_spill]] %s3362_s9 }
  0x1e   :  { %s3372_s27 = sld [smem:[%s3787_s0 + %s3241_s22]]   ;;  %s3245_s22 = smov 24  }
  0x1f   :  { %s3377_s4 = sld [smem:[%s3787_s0 + %s3242_s28]]   ;;  %s3246_s28 = smov 25  }
  0x20   :  { %3808 = sst [smem:[#allocation14_spill]] %s3367_s12 }
  0x21   :  { %s3382_s9 = sld [smem:[%s3787_s0 + %s3243_s7]]   ;;  %s3247_s7 = smov 26  }
  0x22   :  { %s3387_s12 = sld [smem:[%s3787_s0 + %s3244_s15]]   ;;  %s3248_s15 = smov 27  }
  0x24   :  { %3809 = sst [smem:[#allocation15_spill]] %s3372_s27 }
  0x25   :  { %3810 = sst [smem:[#allocation16_spill]] %s3377_s4 }
  0x26   :  { %s3392_s27 = sld [smem:[%s3787_s0 + %s3245_s22]]   ;;  %s3249_s22 = smov 28  }
  0x27   :  { %3811 = sst [smem:[#allocation17_spill]] %s3382_s9 }
  0x28   :  { %3812 = sst [smem:[#allocation18_spill]] %s3387_s12 }
  0x29   :  { %s3397_s4 = sld [smem:[%s3787_s0 + %s3246_s28]]   ;;  %s3250_s28 = smov 29  }
  0x2a   :  { %s3402_s9 = sld [smem:[%s3787_s0 + %s3247_s7]]   ;;  %s3251_s7 = smov 30  }
  0x2b   :  { %s3407_s12 = sld [smem:[%s3787_s0 + %s3248_s15]]   ;;  %s3252_s15 = smov 31  }
  0x2c   :  { %3813 = sst [smem:[#allocation19_spill]] %s3392_s27 }
  0x2d   :  { %s3412_s27 = sld [smem:[%s3787_s0 + %s3249_s22]]   ;;  %s3253_s22 = smov 32  }
  0x2f   :  { %3814 = sst [smem:[#allocation20_spill]] %s3397_s4 }
  0x30   :  { %3815 = sst [smem:[#allocation21_spill]] %s3402_s9 }
  0x31   :  { %3816 = sst [smem:[#allocation22_spill]] %s3407_s12 }
  0x32   :  { %s3417_s4 = sld [smem:[%s3787_s0 + %s3250_s28]]   ;;  %s3254_s28 = smov 33  }
  0x33   :  { %3817 = sst [smem:[#allocation23_spill]] %s3412_s27 }
  0x34   :  { %s3422_s9 = sld [smem:[%s3787_s0 + %s3251_s7]]   ;;  %s3255_s7 = smov 34  }
  0x35   :  { %s3427_s12 = sld [smem:[%s3787_s0 + %s3252_s15]]   ;;  %s3256_s15 = smov 35  }
  0x36   :  { %s3432_s27 = sld [smem:[%s3787_s0 + %s3253_s22]]  }
  0x38   :  { %3818 = sst [smem:[#allocation24_spill]] %s3417_s4 }
  0x39   :  { %s3437_s4 = sld [smem:[%s3787_s0 + %s3254_s28]]  }
  0x3a   :  { %3819 = sst [smem:[#allocation25_spill]] %s3422_s9 }
  0x3b   :  { %3820 = sst [smem:[#allocation26_spill]] %s3427_s12 }
  0x3c   :  { %s3442_s9 = sld [smem:[%s3787_s0 + %s3255_s7]]  }
  0x3d   :  { %s3447_s12 = sld [smem:[%s3787_s0 + %s3256_s15]]  }
  0x3f   :  { %3821 = sst [smem:[#allocation27_spill]] %s3437_s4 }
  0x42   :  { %3822 = sst [smem:[#allocation28_spill]] %s3442_s9 }
  0x43   :  { %76 = vsyncpa [#allocation3], 0 }
  0x44   :  { %78 = vsyncpa [#allocation3 + $0x1], 0  ;;  %s3449_s22 = smov 0   ;;  %s3451_s23 = smov 0  }
  0x45   :  { %s3453_s26 = smov 0   ;;  %s3455_s28 = smov 0  }
  0x46 LB: > { %s3823_s4 = sld [smem:[#allocation27_spill]]  ;;  %s3470_s0 = sadd.s32 4294967295, %s3220_s28   ;;  %s3208_s22 = sphi %s3449_s22, %s3849_s22   ;;  %s3220_s28 = sphi %s3455_s28, %s3852_s28   ;;  %s3216_s26 = sphi %s3453_s26, %s3851_s26   ;;  %s3212_s23 = sphi %s3451_s23, %s3850_s23  }
  0x47   : > { %s2651_s1 = sadd.s32 4294967294, %s3220_s28   ;;  %s3474_s2 = sadd.s32 1, %s3220_s28  }
  0x48   : > { %s836_s7 = sadd.s32 1, %s3216_s26  ;;  %s833_s10 = ssub.s32 %s3220_s28, %s3474_s2 }
  0x49   : > { %p846_p0 = scmp.ne.s32.totalorder %s3216_s26, %s3212_s23  ;;  %p834_p1 = scmp.eq.s32.totalorder %s833_s10, 0 }
  0x4a   : > { %p847_p2 = scmp.eq.s32.totalorder %s3470_s0, 1  ;;  %p852_p3 = scmp.ne.s32.totalorder %s3212_s23, %s3208_s22 }
  0x4b   : > { %p853_p4 = scmp.eq.s32.totalorder %s2651_s1, 1  ;;  %p2654_p7 = scmp.ge.s32.totalorder %s3220_s28, 1 }
  0x4c   : > { %s3485_s11 = scalar_select %p834_p1, %s3216_s26, %s836_s7  }
  0x4d   : > { %p3487_p5 = por %p847_p2, %p846_p0  ;;  %p3491_p6 = por %p853_p4, %p852_p3 }
  0x4e   : > { %p988_p8 = scmp.lt.s32.totalorder %s3220_s28, 3 }
  0x50   : > { %p989_p9 = pnand %p2654_p7, %p988_p8 }
  0x51   : > { %s3826_s5 = sld [smem:[#allocation5_spill]] (!%p989_p9)  ;;  %s2656_s18 = sshll.u32 (!%p989_p9), %s3470_s0, 2 }
  0x52   : > { %992 = sbr.rel (%p989_p9) target bundleno = 2731 (0xaab), region = 160  ;;  %p1082_p10 = scmp.lt.s32.totalorder (!%p989_p9), %s2656_s18, 7 }
  0x53   : > { %s3827_s3 = sld [smem:[#allocation7_spill]] (!%p989_p9) }
  0x54   : > { %s3828_s8 = sld [smem:[#allocation8_spill]] (!%p989_p9) }
  0x55   : > { %s3829_s6 = sld [smem:[#allocation9_spill]] (!%p989_p9) }
  0x56   : > { %s3830_s10 = sld [smem:[#allocation10_spill]] (!%p989_p9) }
  0x57   : > { %v3097_v0 = vld [vmem:[%s3282_s13 + $0x8] sm:$0xff]   ;;  %v3098_v1 = vld [vmem:[%s3282_s13] sm:$0xff]   ;;  %s3854_s18 = smov (!%p1082_p10, %s2656_s18), 7  ;;  %vm1135_vm0 = vcmask 261120   ;;  %v3103_v17 = vld [vmem:[%s3327_s24 + $0x18] sm:$0xff]   ;;  %v3257_v18 = vmov 0.0  }
  0x58   : > { %2831 = vmatprep.subr.bf16.mxu0 %v3097_v0  ;;  %s2657_s1 = sshll.u32 %s3854_s18, 2  ;;  %v3101_v4 = vld [vmem:[%s3292_s21 + $0x8] sm:$0xff]   ;;  %v3102_v5 = vld [vmem:[%s3292_s21] sm:$0xff]   ;;  %2859 = vmatprep.subr.bf16.mxu1 %v3257_v18  ;;  %v3104_v19 = vld [vmem:[%s3327_s24 + $0x10] sm:$0xff]   ;;  %vm3258_vm1 = vmmov 0   ;;  %vm1374_vm2 = vcmask 523264  }
  0x59   : > { %2832 = vmatpush3.bf16.msra.mxu0 %v3097_v0  ;;  %s1085_s7 = scalar_lea.vmem %s3826_s5, %s2657_s1  ;;  %v2660_v9 = vld [vmem:[%s3287_s17] ss:$0 sm:$0xff]  ;;  %v3105_v20 = vld [vmem:[%s3327_s24 + $0x8] sm:$0xff]   ;;  %2861 = vmatprep.mubr.msk.bf16.mxu1 %vm3258_vm1, %v3257_v18  ;;  %vm1437_vm3 = vcmask 130048   ;;  %s3831_s18 = sld [smem:[#allocation12_spill]] }
  0x5a   : > { %2833 = vmatprep.subr.bf16.mxu0 %v3098_v1  ;;  %v3099_v2 = vld [vmem:[%s1085_s7] sm:$0xff]   ;;  %v3100_v3 = vld [vmem:[%s1085_s7 + $0x8] sm:$0xff]   ;;  %s3832_s1 = sld [smem:[#allocation11_spill]] }
  0x5b   : > { %2835 = vmatprep.mubr.msk.bf16.mxu0 %vm1135_vm0, %v3099_v2  ;;  %v3106_v21 = vld [vmem:[%s3327_s24] sm:$0xff]   ;;  %s3833_s7 = sld [smem:[#allocation19_spill]] }
  0x5c   : > { %v2667_v22 = vld [vmem:[%s3297_s25] ss:$0 sm:$0xff]  ;;  %s3837_s5 = sld [smem:[#allocation15_spill]] }
  0x5d   : > { %2834 = vmatpush3.bf16.msra.mxu0 %v3098_v1  ;;  %v2673_v27 = vld [vmem:[%s3827_s3] ss:$0 sm:$0xff]  ;;  %s3836_s3 = sld [smem:[#allocation16_spill]] }
  0x5e   : > { %2839 = vmatprep.subr.bf16.mxu0 %v3101_v4  ;;  %v2676_v29 = vld [vmem:[%s3317_s14] ss:$0 sm:$0xff]  ;;  %s3848_s9 = sld [smem:[#allocation28_spill]] }
  0x5f   : > { %v2672_v30 = vld [vmem:[%s3302_s29] ss:$0 sm:$0xff] }
  0x60   : > { %2836 = vmatmul.mubr.msk.bf16.vlgmr.msra.gmra.mxu0 %vm1135_vm0, %v3100_v3  ;;  %v2675_v31 = vld [vmem:[%s3828_s8] ss:$0 sm:$0xff] }
  0x61   : > { %2840 = vmatpush3.bf16.msra.mxu0 %v3101_v4  ;;  %v2674_v41 = vld [vmem:[%s3322_s19] ss:$0 sm:$0xff] }
  0x62   : > { %2841 = vmatprep.subr.bf16.mxu0 %v3102_v5  ;;  %v3107_v1 = vld [vmem:[%s3829_s6] sm:$0xff]   ;;  %s3838_s6 = sld [smem:[#allocation17_spill]] }
  0x63   : > { %2860 = vmatpush3.bf16.msra.mxu1 %v3107_v1  ;;  %v2677_v2 = vld [vmem:[%s3332_s30] ss:$0 sm:$0xff]  ;;  %v3120_v1 = vld [vmem:[%s3833_s7 + $0x8] sm:$0xff]  }
  0x64   : > { %2865 = vmatprep.subr.bf16.mxu1 %v3257_v18 }
  0x65   : > { %2842 = vmatpush3.bf16.msra.mxu0 %v3102_v5 }
  0x66   : > { %2847 = vmatprep.subr.bf16.mxu0 %v3257_v18 }
 0x120   : > { %v2837_v6 = vpop.f32.mrf.mxu0 }
 0x121   : > { %v3512_v14 = vadd.f32 %v2837_v6, %v2660_v9 }
 0x122   : > { %v1176_v7 = vpop.f32.mrf.mxu0 }
 0x123   : > { %v3508_v12 = vadd.f32 %v2660_v9, %v1176_v7 }
 0x124   : > { %v2838_v8 = vpop.f32.mrf.mxu0 }
 0x125   : > { %v3506_v10 = vadd.f32 %v2838_v8, %v2660_v9 }
 0x126   : > { %v1179_v11 = vpop.f32.mrf.mxu0 }
 0x127   : > { %v3510_v13 = vadd.f32 %v2660_v9, %v1179_v11  ;;  %v1192_v16 = vpack.c.bf16 %v3506_v10, %v3512_v14 }
 0x129   : > { %v1191_v15 = vpack.c.bf16 %v3510_v13, %v3508_v12 }
 0x12b   : > { %2843 = vmatprep.mubr.msk.bf16.mxu0 %vm1135_vm0, %v1191_v15 }
 0x12c   : > { %2844 = vmatmul.mubr.msk.bf16.vlgmr.msra.gmra.mxu0 %vm1135_vm0, %v1192_v16  ;;  %v3108_v16 = vld [vmem:[%s3347_s20 + $0x18] sm:$0xff]  }
 0x12d   : > { %2848 = vmatpush3.bf16.msra.mxu0 %v3103_v17  ;;  %2855 = vmatprep.mubr.msk.bf16.mxu0 %vm3258_vm1, %v3257_v18  ;;  %v3109_v17 = vld [vmem:[%s3347_s20 + $0x10] sm:$0xff]  }
 0x12e   : > { %2849 = vmatprep.subr.bf16.mxu0 %v3257_v18 }
 0x131   : > { %2850 = vmatpush3.bf16.msra.mxu0 %v3104_v19  ;;  %v3110_v19 = vld [vmem:[%s3347_s20 + $0x8] sm:$0xff]  }
 0x132   : > { %2851 = vmatprep.subr.bf16.mxu0 %v3257_v18 }
 0x135   : > { %2852 = vmatpush3.bf16.msra.mxu0 %v3105_v20  ;;  %v3111_v20 = vld [vmem:[%s3347_s20] sm:$0xff]  }
 0x136   : > { %2853 = vmatprep.subr.bf16.mxu0 %v3257_v18 }
 0x139   : > { %2854 = vmatpush3.bf16.msra.mxu0 %v3106_v21  ;;  %v2683_v21 = vld [vmem:[%s3830_s10] ss:$0 sm:$0xff]  ;;  %s3259_s10 = smov 32  }
 0x13a   : > { %2877 = vmatprep.subr.bf16.mxu0 %v3257_v18 }
 0x1ec   : > { %v2845_v23 = vpop.f32.mrf.mxu0 }
 0x1ed   : > { %v1265_v24 = vadd.f32 %v2845_v23, %v2667_v22 }
 0x1ee   : > { %v1256_v25 = vpop.f32.mrf.mxu0 }
 0x1ef   : > { %v1273_v26 = vmax.f32 %v1265_v24, 0.0  ;;  %v1257_v28 = vadd.f32 %v2667_v22, %v1256_v25 }
 0x1f0   : > { %v2846_v32 = vpop.f32.mrf.mxu0 }
 0x1f1   : > { %v1271_v33 = vmax.f32 %v1257_v28, 0.0  ;;  %v1268_v34 = vadd.f32 %v2846_v32, %v2667_v22  ;;  %v1294_v35 = vmul.f32 %v2673_v27, %v1273_v26  ;;  %v1322_v37 = vmul.f32 %v2676_v29, %v1273_v26 }
 0x1f2   : > { %v1259_v36 = vpop.f32.mrf.mxu0 }
 0x1f3   : > { %v1286_v38 = vmul.f32 %v2672_v30, %v1271_v33  ;;  %v1314_v39 = vmul.f32 %v2675_v31, %v1271_v33  ;;  %v1260_v40 = vadd.f32 %v2667_v22, %v1259_v36  ;;  %v1274_v42 = vmax.f32 %v1268_v34, 0.0 }
 0x1f5   : > { %v1296_v43 = vadd.f32 %v1294_v35, %v1286_v38  ;;  %v1324_v44 = vadd.f32 %v1322_v37, %v1314_v39  ;;  %v1272_v45 = vmax.f32 %v1260_v40, 0.0  ;;  %v1295_v48 = vmul.f32 %v2673_v27, %v1274_v42 }
 0x1f6   : > { %v1323_v49 = vmul.f32 %v2676_v29, %v1274_v42  ;;  %v3112_v42 = vld [vmem:[%s3831_s18 + $0x8] sm:$0xff]  }
 0x1f7   : > { %v3540_v46 = vadd.f32 %v2674_v41, %v1296_v43  ;;  %v3542_v47 = vadd.f32 %v2674_v41, %v1324_v44  ;;  %v1287_v50 = vmul.f32 %v2672_v30, %v1272_v45  ;;  %v1315_v51 = vmul.f32 %v2675_v31, %v1272_v45  ;;  %v3113_v43 = vld [vmem:[%s3831_s18] sm:$0xff]  }
 0x1f8   : > { %v2686_v44 = vld [vmem:[%s3832_s1] ss:$0 sm:$0xff]  ;;  %s3834_s1 = sld [smem:[#allocation13_spill]] }
 0x1f9   : > { %v1306_v52 = vmax.f32 %v3540_v46, 0.0  ;;  %v1328_v53 = vmax.f32 %v3542_v47, 0.0  ;;  %v1297_v54 = vadd.f32 %v1295_v48, %v1287_v50  ;;  %v1325_v55 = vadd.f32 %v1323_v49, %v1315_v51 }
 0x1fb   : > { %v3546_v56 = vadd.f32 %v2674_v41, %v1297_v54  ;;  %v3548_v57 = vadd.f32 %v2674_v41, %v1325_v55  ;;  %v1330_v58 = vadd.f32 %v1328_v53, %v1306_v52 }
 0x1fd   : > { %v1307_v59 = vmax.f32 %v3546_v56, 0.0  ;;  %v1329_v60 = vmax.f32 %v3548_v57, 0.0  ;;  %v1332_v62 = vmul.f32 0.5, %v1330_v58 }
 0x1ff   : > { %v1331_v61 = vadd.f32 %v1329_v60, %v1307_v59 }
 0x201   : > { %v1333_v63 = vmul.f32 0.5, %v1331_v61  ;;  %v3116_v61 = vld [vmem:[%s3833_s7 + $0x28] sm:$0xff]  }
 0x203   : > { %v1334_v0 = vpack.c.bf16 %v1333_v63, %v1332_v62  ;;  %v3117_v62 = vld [vmem:[%s3833_s7 + $0x20] sm:$0xff]   ;;  %v3118_v63 = vld [vmem:[%s3833_s7 + $0x18] sm:$0xff]  }
 0x205   : > { %2856 = vmatmul.mubr.msk.bf16.vlgmr.msra.gmra.mxu0 %vm1374_vm2, %v1334_v0  ;;  %v3119_v0 = vld [vmem:[%s3833_s7 + $0x10] sm:$0xff]  }
 0x206   : > { %2885 = vmatprep.mubr.msk.bf16.mxu0 %vm3258_vm1, %v3257_v18  ;;  %2878 = vmatpush3.bf16.msra.mxu0 %v3108_v16 }
 0x207   : > { %2879 = vmatprep.subr.bf16.mxu0 %v3257_v18 }
 0x20a   : > { %2880 = vmatpush3.bf16.msra.mxu0 %v3109_v17 }
 0x20b   : > { %2881 = vmatprep.subr.bf16.mxu0 %v3257_v18 }
 0x20e   : > { %2882 = vmatpush3.bf16.msra.mxu0 %v3110_v19 }
 0x20f   : > { %2883 = vmatprep.subr.bf16.mxu0 %v3257_v18 }
 0x212   : > { %2884 = vmatpush3.bf16.msra.mxu0 %v3111_v20 }
 0x213   : > { %2897 = vmatprep.subr.bf16.mxu0 %v3257_v18 }
 0x2c5   : > { %v1412_v3 = vpop.f32.mrf.mxu0 }
 0x2c6   : > { %v1413_v5 = vadd.f32 %v2677_v2, %v1412_v3  ;;  %v2693_v3 = vld [vmem:[%s3834_s1] ss:$0 sm:$0xff]  ;;  %s3839_s1 = sld [smem:[#allocation18_spill]] }
 0x2c7   : > { %v2857_v4 = vpop.f32.mrf.mxu0 }
 0x2c8   : > { %v1419_v9 = vmax.f32 %v1413_v5, 0.0 }
 0x2c9   : > { %v1415_v6 = vpop.f32.mrf.mxu0 }
 0x2ca   : > { %v1416_v7 = vadd.f32 %v2677_v2, %v1415_v6  ;;  %v3121_v2 = vld [vmem:[%s3833_s7] sm:$0xff]  }
 0x2cb   : > { %v2858_v8 = vpop.f32.mrf.mxu0 }
 0x2cc   : > { %v1420_v11 = vmax.f32 %v1416_v7, 0.0 }
 0x2ce   : > { %v1421_v15 = vpack.c.bf16 %v1420_v11, %v1419_v9 }
 0x2d0   : > { %2862 = vmatmul.mubr.msk.bf16.vlgmr.msra.gmra.mxu1 %vm1437_vm3, %v1421_v15 }
 0x2d1   : > { %2873 = vmatprep.mubr.msk.bf16.mxu1 %vm3258_vm1, %v3257_v18  ;;  %2866 = vmatpush3.bf16.msra.mxu1 %v3108_v16 }
 0x2d2   : > { %2867 = vmatprep.subr.bf16.mxu1 %v3257_v18 }
 0x2d5   : > { %2868 = vmatpush3.bf16.msra.mxu1 %v3109_v17 }
 0x2d6   : > { %2869 = vmatprep.subr.bf16.mxu1 %v3257_v18 }
 0x2d9   : > { %2870 = vmatpush3.bf16.msra.mxu1 %v3110_v19 }
 0x2da   : > { %2871 = vmatprep.subr.bf16.mxu1 %v3257_v18 }
 0x2dd   : > { %2872 = vmatpush3.bf16.msra.mxu1 %v3111_v20 }
 0x2de   : > { %2889 = vmatprep.subr.bf16.mxu1 %v3257_v18 }
 0x390   : > { %v1475_v22 = vpop.f32.mrf.mxu1 }
 0x391   : > { %v1476_v23 = vadd.f32 %v2683_v21, %v1475_v22 }
 0x392   : > { %v2863_v24 = vpop.f32.mrf.mxu1 }
 0x393   : > { %v1482_v25 = vmul.f32 0.16666667, %v1476_v23 }
 0x394   : > { %v1478_v26 = vpop.f32.mrf.mxu1 }
 0x395   : > { %v1484_v27 = vadd.f32 0.5, %v1482_v25  ;;  %v1479_v28 = vadd.f32 %v2683_v21, %v1478_v26 }
 0x396   : > { %v2864_v29 = vpop.f32.mrf.mxu1 }
 0x397   : > { %v1486_v30 = vmax.f32 %v1484_v27, 0.0  ;;  %v1483_v31 = vmul.f32 0.16666667, %v1479_v28 }
 0x399   : > { %v1485_v32 = vadd.f32 0.5, %v1483_v31  ;;  %v1488_v33 = vmin.f32 %v1486_v30, 1.0 }
 0x39b   : > { %v1487_v34 = vmax.f32 %v1485_v32, 0.0  ;;  %v1490_v36 = vmul.f32 %v1488_v33, %v1306_v52  ;;  %v1492_v37 = vmul.f32 %v1488_v33, %v1328_v53 }
 0x39d   : > { %v1489_v35 = vmin.f32 %v1487_v34, 1.0  ;;  %v2701_v34 = vld [vmem:[%s3836_s3] ss:$0 sm:$0xff]  ;;  %s3841_s3 = sld [smem:[#allocation23_spill]] }
 0x39f   : > { %v1491_v38 = vmul.f32 %v1489_v35, %v1307_v59  ;;  %v1493_v39 = vmul.f32 %v1489_v35, %v1329_v60  ;;  %v2699_v35 = vld [vmem:[%s3837_s5] ss:$0 sm:$0xff]  ;;  %s3840_s5 = sld [smem:[#allocation21_spill]] }
 0x3a1   : > { %v1494_v40 = vpack.c.bf16 %v1491_v38, %v1490_v36  ;;  %v1580_v41 = vpack.c.bf16 %v1493_v39, %v1492_v37  ;;  %v2702_v36 = vld [vmem:[%s3838_s6] ss:$0 sm:$0xff]  ;;  %s3842_s6 = sld [smem:[#allocation20_spill]] }
 0x3a3   : > { %2874 = vmatmul.mubr.msk.bf16.vlgmr.msra.gmra.mxu1 %vm1374_vm2, %v1494_v40  ;;  %2886 = vmatmul.mubr.msk.bf16.vlgmr.msra.gmra.mxu0 %vm1374_vm2, %v1580_v41 }
 0x3a4   : > { %2893 = vmatprep.mubr.msk.bf16.mxu1 %vm3258_vm1, %v3257_v18  ;;  %2901 = vmatprep.mubr.msk.bf16.mxu0 %vm3258_vm1, %v3257_v18 }
 0x3a5   : > { %2890 = vmatpush3.bf16.msra.mxu1 %v3112_v42  ;;  %2898 = vmatpush3.bf16.msra.mxu0 %v3112_v42 }
 0x3a6   : > { %2891 = vmatprep.subr.bf16.mxu1 %v3257_v18  ;;  %2899 = vmatprep.subr.bf16.mxu0 %v3257_v18 }
 0x3a9   : > { %2892 = vmatpush3.bf16.msra.mxu1 %v3113_v43  ;;  %2900 = vmatpush3.bf16.msra.mxu0 %v3113_v43 }
 0x3aa   : > { %2905 = vmatprep.subr.bf16.mxu1 %v3257_v18  ;;  %2925 = vmatprep.subr.bf16.mxu0 %v3257_v18 }
 0x463   : > { %v1571_v45 = vpop.f32.mrf.mxu1  ;;  %v1618_v46 = vpop.f32.mrf.mxu0 }
 0x464   : > { %v1572_v47 = vadd.f32 %v2686_v44, %v1571_v45  ;;  %v1619_v48 = vadd.f32 %v2686_v44, %v1618_v46  ;;  %v2700_v45 = vld [vmem:[%s3839_s1] ss:$0 sm:$0xff]  ;;  %s3844_s1 = sld [smem:[#allocation26_spill]] }
 0x465   : > { %v2875_v49 = vpop.f32.mrf.mxu1  ;;  %v2887_v50 = vpop.f32.mrf.mxu0 }
 0x466   : > { %v3595_v51 = vadd.f32 %v1572_v47, %v3508_v12  ;;  %v3598_v52 = vadd.f32 %v1619_v48, %v3512_v14 }
 0x467   : > { %v1574_v53 = vpop.f32.mrf.mxu1  ;;  %v1621_v54 = vpop.f32.mrf.mxu0 }
 0x468   : > { %v1575_v55 = vadd.f32 %v2686_v44, %v1574_v53  ;;  %v1622_v56 = vadd.f32 %v2686_v44, %v1621_v54  ;;  %2143 = vrot.lane.b32.xlu1 %v3595_v51, %s3259_s10  ;;  %2197 = vrot.lane.b32.xlu0 %v3598_v52, %s3259_s10 }
 0x469   : > { %v2876_v57 = vpop.f32.mrf.mxu1  ;;  %v2888_v58 = vpop.f32.mrf.mxu0 }
 0x46a   : > { %v3603_v59 = vadd.f32 %v1575_v55, %v3510_v13  ;;  %v3606_v12 = vadd.f32 %v1622_v56, %v3506_v10  ;;  %v3114_v10 = vld [vmem:[%s3833_s7 + $0x38] sm:$0xff]   ;;  %v3115_v13 = vld [vmem:[%s3833_s7 + $0x30] sm:$0xff]  }
 0x46c   : > { %v1627_v14 = vpack.c.bf16 %v3603_v59, %v3595_v51  ;;  %v1705_v60 = vpack.c.bf16 %v3606_v12, %v3598_v52  ;;  %2145 = vrot.lane.b32.xlu1 %v3603_v59, %s3259_s10  ;;  %2199 = vrot.lane.b32.xlu0 %v3606_v12, %s3259_s10  ;;  %s3835_s10 = sld [smem:[#allocation14_spill]] }
 0x46e   : > { %2894 = vmatmul.mubr.msk.bf16.vlgmr.msra.gmra.mxu1 %vm1135_vm0, %v1627_v14  ;;  %2902 = vmatmul.mubr.msk.bf16.vlgmr.msra.gmra.mxu0 %vm1135_vm0, %v1705_v60 }
 0x46f   : > { %2921 = vmatprep.mubr.msk.bf16.mxu1 %vm3258_vm1, %v3257_v18  ;;  %2929 = vmatprep.mubr.msk.bf16.mxu0 %vm3258_vm1, %v3257_v18 }
 0x470   : > { %2906 = vmatpush3.bf16.msra.mxu1 %v3114_v10 }
 0x471   : > { %2907 = vmatprep.subr.bf16.mxu1 %v3257_v18 }
 0x472   : > { %v2698_v30 = vld [vmem:[%s3835_s10] ss:$0 sm:$0xff]  ;;  %s3843_s10 = sld [smem:[#allocation22_spill]] }
 0x474   : > { %2908 = vmatpush3.bf16.msra.mxu1 %v3115_v13 }
 0x475   : > { %2909 = vmatprep.subr.bf16.mxu1 %v3257_v18 }
 0x478   : > { %2910 = vmatpush3.bf16.msra.mxu1 %v3116_v61 }
 0x479   : > { %2911 = vmatprep.subr.bf16.mxu1 %v3257_v18 }
 0x47c   : > { %2912 = vmatpush3.bf16.msra.mxu1 %v3117_v62 }
 0x47d   : > { %2913 = vmatprep.subr.bf16.mxu1 %v3257_v18 }
 0x480   : > { %2914 = vmatpush3.bf16.msra.mxu1 %v3118_v63 }
 0x481   : > { %2915 = vmatprep.subr.bf16.mxu1 %v3257_v18 }
 0x484   : > { %2916 = vmatpush3.bf16.msra.mxu1 %v3119_v0 }
 0x485   : > { %2917 = vmatprep.subr.bf16.mxu1 %v3257_v18 }
 0x488   : > { %2918 = vmatpush3.bf16.msra.mxu1 %v3120_v1 }
 0x489   : > { %2919 = vmatprep.subr.bf16.mxu1 %v3257_v18 }
 0x48c   : > { %2920 = vmatpush3.bf16.msra.mxu1 %v3121_v2 }
 0x48d   : > { %2953 = vmatprep.subr.bf16.mxu1 %v3257_v18 }
 0x52e   : > { %v1688_v4 = vpop.f32.mrf.mxu1  ;;  %v1743_v5 = vpop.f32.mrf.mxu0 }
 0x52f   : > { %v1689_v6 = vadd.f32 %v2693_v3, %v1688_v4  ;;  %v1744_v7 = vadd.f32 %v2693_v3, %v1743_v5 }
 0x530   : > { %v2895_v8 = vpop.f32.mrf.mxu1  ;;  %v2903_v9 = vpop.f32.mrf.mxu0 }
 0x531   : > { %v1695_v11 = vmul.f32 0.16666667, %v1689_v6  ;;  %v1750_v15 = vmul.f32 0.16666667, %v1744_v7 }
 0x532   : > { %v1691_v16 = vpop.f32.mrf.mxu1  ;;  %v1746_v17 = vpop.f32.mrf.mxu0 }
 0x533   : > { %v1697_v19 = vadd.f32 0.5, %v1695_v11  ;;  %v1752_v20 = vadd.f32 0.5, %v1750_v15  ;;  %v1692_v21 = vadd.f32 %v2693_v3, %v1691_v16  ;;  %v1747_v22 = vadd.f32 %v2693_v3, %v1746_v17 }
 0x534   : > { %v2896_v23 = vpop.f32.mrf.mxu1  ;;  %v2904_v24 = vpop.f32.mrf.mxu0 }
 0x535   : > { %v1699_v25 = vmax.f32 %v1697_v19, 0.0  ;;  %v1754_v26 = vmax.f32 %v1752_v20, 0.0  ;;  %v1696_v27 = vmul.f32 0.16666667, %v1692_v21  ;;  %v1751_v28 = vmul.f32 0.16666667, %v1747_v22 }
 0x537   : > { %v1701_v29 = vmin.f32 %v1699_v25, 1.0  ;;  %v1756_v31 = vmin.f32 %v1754_v26, 1.0  ;;  %v1698_v32 = vadd.f32 0.5, %v1696_v27  ;;  %v1753_v33 = vadd.f32 0.5, %v1751_v28  ;;  %v3122_v26 = vld [vmem:[%s3840_s5 + $0x8] sm:$0xff]   ;;  %v3123_v27 = vld [vmem:[%s3840_s5] sm:$0xff]  }
 0x538   : > { %2926 = vmatpush3.bf16.msra.mxu0 %v3122_v26  ;;  %v3124_v28 = vld [vmem:[%s3841_s3 + $0x38] sm:$0xff]  }
 0x539   : > { %v1703_v37 = vmul.f32 %v1701_v29, %v1689_v6  ;;  %v1758_v38 = vmul.f32 %v1756_v31, %v1744_v7  ;;  %v1700_v39 = vmax.f32 %v1698_v32, 0.0  ;;  %v1755_v40 = vmax.f32 %v1753_v33, 0.0  ;;  %2927 = vmatprep.subr.bf16.mxu0 %v3257_v18  ;;  %v3125_v29 = vld [vmem:[%s3841_s3 + $0x30] sm:$0xff]   ;;  %v2703_v31 = vld [vmem:[%s3842_s6] ss:$0 sm:$0xff]  ;;  %s3845_s6 = sld [smem:[#allocation24_spill]] }
 0x53b   : > { %v1771_v41 = vmul.f32 %v2698_v30, %v1703_v37  ;;  %v1807_v42 = vmul.f32 %v2701_v34, %v1703_v37  ;;  %v1779_v43 = vmul.f32 %v2699_v35, %v1758_v38  ;;  %v1815_v44 = vmul.f32 %v2702_v36, %v1758_v38 }
 0x53c   : > { %v1702_v46 = vmin.f32 %v1700_v39, 1.0  ;;  %v1757_v47 = vmin.f32 %v1755_v40, 1.0  ;;  %2928 = vmatpush3.bf16.msra.mxu0 %v3123_v27 }
 0x53d   : > { %v1781_v48 = vadd.f32 %v1779_v43, %v1771_v41  ;;  %v1817_v49 = vadd.f32 %v1815_v44, %v1807_v42  ;;  %2933 = vmatprep.subr.bf16.mxu0 %v3257_v18  ;;  %v3127_v41 = vld [vmem:[%s3841_s3 + $0x20] sm:$0xff]   ;;  %v3128_v42 = vld [vmem:[%s3841_s3 + $0x18] sm:$0xff]   ;;  %v3129_v43 = vld [vmem:[%s3841_s3 + $0x10] sm:$0xff]  }
 0x53e   : > { %v1704_v50 = vmul.f32 %v1702_v46, %v1692_v21  ;;  %v1759_v53 = vmul.f32 %v1757_v47, %v1747_v22  ;;  %v3130_v44 = vld [vmem:[%s3841_s3 + $0x8] sm:$0xff]   ;;  %v2712_v46 = vld [vmem:[%s3843_s10] ss:$0 sm:$0xff]  ;;  %s3846_s10 = sld [smem:[#allocation25_spill]] }
 0x53f   : > { %v1789_v54 = vadd.f32 %v2700_v45, %v1781_v48  ;;  %v1819_v55 = vadd.f32 %v2700_v45, %v1817_v49 }
 0x540   : > { %v1772_v56 = vmul.f32 %v2698_v30, %v1704_v50  ;;  %v1808_v57 = vmul.f32 %v2701_v34, %v1704_v50  ;;  %v1780_v58 = vmul.f32 %v2699_v35, %v1759_v53  ;;  %v1816_v14 = vmul.f32 %v2702_v36, %v1759_v53  ;;  %v3126_v30 = vld [vmem:[%s3841_s3 + $0x28] sm:$0xff]  }
 0x541   : > { %v1791_v60 = vmul.f32 0.16666667, %v1789_v54  ;;  %v1821_v10 = vmul.f32 0.16666667, %v1819_v55 }
 0x542   : > { %v1782_v13 = vadd.f32 %v1780_v58, %v1772_v56  ;;  %v1818_v61 = vadd.f32 %v1816_v14, %v1808_v57 }
 0x543   : > { %v1793_v62 = vadd.f32 0.5, %v1791_v60  ;;  %v1823_v63 = vadd.f32 0.5, %v1821_v10 }
 0x544   : > { %v1790_v0 = vadd.f32 %v2700_v45, %v1782_v13  ;;  %v1820_v1 = vadd.f32 %v2700_v45, %v1818_v61  ;;  %v3131_v45 = vld [vmem:[%s3841_s3] sm:$0xff]  }
 0x545   : > { %v1795_v2 = vmax.f32 %v1793_v62, 0.0  ;;  %v1825_v3 = vmax.f32 %v1823_v63, 0.0 }
 0x546   : > { %v1792_v4 = vmul.f32 0.16666667, %v1790_v0  ;;  %v1822_v5 = vmul.f32 0.16666667, %v1820_v1 }
 0x547   : > { %v1797_v6 = vmin.f32 %v1795_v2, 1.0  ;;  %v1827_v7 = vmin.f32 %v1825_v3, 1.0 }
 0x548   : > { %v1794_v8 = vadd.f32 0.5, %v1792_v4  ;;  %v1824_v9 = vadd.f32 0.5, %v1822_v5  ;;  %v3133_v4 = vld [vmem:[%s3844_s1 + $0x10] sm:$0xff]   ;;  %v3134_v5 = vld [vmem:[%s3844_s1 + $0x8] sm:$0xff]  }
 0x549   : > { %v3642_v16 = vmul.f32 %v1797_v6, %v1789_v54  ;;  %v3644_v17 = vmul.f32 %v1827_v7, %v1819_v55  ;;  %v3135_v6 = vld [vmem:[%s3844_s1] sm:$0xff]   ;;  %v3140_v7 = vld [vmem:[%s3823_s4 + $0x38] sm:$0xff]  }
 0x54a   : > { %v1796_v11 = vmax.f32 %v1794_v8, 0.0  ;;  %v1826_v15 = vmax.f32 %v1824_v9, 0.0  ;;  %v2198_v8 = vpop.permute.xlu0 %2197  ;;  %v2716_v9 = vld [vmem:[%s3845_s6] ss:$0 sm:$0xff]  ;;  %s3847_s6 = sld [smem:[#allocation6_spill]] }
 0x54b   : > { %v1831_v23 = vmax.f32 %v3642_v16, %v3644_v17 }
 0x54c   : > { %v1798_v19 = vmin.f32 %v1796_v11, 1.0  ;;  %v1828_v20 = vmin.f32 %v1826_v15, 1.0 }
 0x54e   : > { %v3646_v21 = vmul.f32 %v1798_v19, %v1790_v0  ;;  %v3648_v22 = vmul.f32 %v1828_v20, %v1820_v1  ;;  %v3132_v1 = vld [vmem:[%s3844_s1 + $0x18] sm:$0xff]   ;;  %v2200_v19 = vpop.permute.xlu0 %2199  ;;  %s2658_s1 = sshll.u32 %s3470_s0, 1 }
 0x54f   : > { %p1088_p11 = scmp.lt.s32.totalorder %s2658_s1, 3 }
 0x550   : > { %v1832_v24 = vmax.f32 %v3646_v21, %v3648_v22 }
 0x551   : > { %s3856_s1 = smov (!%p1088_p11, %s2658_s1), 3 }
 0x552   : > { %v1833_v25 = vpack.c.bf16 %v1832_v24, %v1831_v23  ;;  %v2203_v24 = vsel %vm1135_vm0, %v3598_v52, %v2198_v8  ;;  %v3138_v52 = vld [vmem:[%s3846_s10 + $0x8] sm:$0xff]   ;;  %s2659_s3 = sshll.u32 %s3856_s1, 2  ;;  %s2750_s1 = sshll.u32 %s3470_s0, 8 }
 0x553   : > { %s3747_s7 = scalar_lea.hbm %s3447_s12, %s2750_s1  ;;  %s3261_s0 = smov [#allocation2]  }
 0x554   : > { %2922 = vmatmul.mubr.bf16.vlgmr.msra.gmra.mxu1 %v1833_v25  ;;  %v2204_v25 = vsel %vm1135_vm0, %v3606_v12, %v2200_v19 }
 0x555   : > { %2969 = vmatprep.mubr.msk.bf16.mxu1 %vm3258_vm1, %v3257_v18  ;;  %2954 = vmatpush3.bf16.msra.mxu1 %v3124_v28 }
 0x556   : > { %2955 = vmatprep.subr.bf16.mxu1 %v3257_v18 }
 0x559   : > { %2956 = vmatpush3.bf16.msra.mxu1 %v3125_v29 }
 0x55a   : > { %2957 = vmatprep.subr.bf16.mxu1 %v3257_v18 }
 0x55d   : > { %2958 = vmatpush3.bf16.msra.mxu1 %v3126_v30 }
 0x55e   : > { %2959 = vmatprep.subr.bf16.mxu1 %v3257_v18 }
 0x561   : > { %2960 = vmatpush3.bf16.msra.mxu1 %v3127_v41 }
 0x562   : > { %2961 = vmatprep.subr.bf16.mxu1 %v3257_v18 }
 0x565   : > { %2962 = vmatpush3.bf16.msra.mxu1 %v3128_v42 }
 0x566   : > { %2963 = vmatprep.subr.bf16.mxu1 %v3257_v18 }
 0x569   : > { %2964 = vmatpush3.bf16.msra.mxu1 %v3129_v43 }
 0x56a   : > { %2965 = vmatprep.subr.bf16.mxu1 %v3257_v18 }
 0x56d   : > { %2966 = vmatpush3.bf16.msra.mxu1 %v3130_v44 }
 0x56e   : > { %2967 = vmatprep.subr.bf16.mxu1 %v3257_v18 }
 0x571   : > { %2968 = vmatpush3.bf16.msra.mxu1 %v3131_v45 }
 0x572   : > { %2997 = vmatprep.subr.bf16.mxu1 %v3257_v18 }
 0x614   : > { %v1939_v32 = vpop.f32.mrf.mxu1 }
 0x615   : > { %v1940_v34 = vadd.f32 %v2703_v31, %v1939_v32  ;;  %v2144_v32 = vpop.permute.xlu1 %2143 }
 0x616   : > { %v2923_v33 = vpop.f32.mrf.mxu1 }
 0x617   : > { %v1946_v38 = vmax.f32 %v1940_v34, 0.0  ;;  %v3137_v33 = vld [vmem:[%s3846_s10 + $0x10] sm:$0xff]  }
 0x618   : > { %v1942_v35 = vpop.f32.mrf.mxu1 }
 0x619   : > { %v1943_v36 = vadd.f32 %v2703_v31, %v1942_v35  ;;  %v2146_v12 = vpop.permute.xlu1 %2145 }
 0x61a   : > { %v2924_v37 = vpop.f32.mrf.mxu1 }
 0x61b   : > { %v1947_v39 = vmax.f32 %v1943_v36, 0.0  ;;  %v2150_v36 = vsel %vm1135_vm0, %v3603_v59, %v2146_v12  ;;  %v3139_v37 = vld [vmem:[%s3846_s10] sm:$0xff]   ;;  %v3142_v59 = vld [vmem:[%s3823_s4 + $0x28] sm:$0xff]  }
 0x61d   : > { %v1948_v40 = vpack.c.bf16 %v1947_v39, %v1946_v38  ;;  %v2149_v39 = vsel %vm1135_vm0, %v3595_v51, %v2144_v32  ;;  %v3145_v51 = vld [vmem:[%s3823_s4 + $0x10] sm:$0xff]  }
 0x61f   : > { %2930 = vmatmul.mubr.msk.bf16.vlgmr.msra.gmra.mxu0 %vm1135_vm0, %v1948_v40 }
 0x620   : > { %2934 = vmatpush3.bf16.msra.mxu0 %v3124_v28  ;;  %2949 = vmatprep.mubr.msk.bf16.mxu0 %vm3258_vm1, %v3257_v18 }
 0x621   : > { %2935 = vmatprep.subr.bf16.mxu0 %v3257_v18 }
 0x624   : > { %2936 = vmatpush3.bf16.msra.mxu0 %v3125_v29 }
 0x625   : > { %2937 = vmatprep.subr.bf16.mxu0 %v3257_v18 }
 0x628   : > { %2938 = vmatpush3.bf16.msra.mxu0 %v3126_v30  ;;  %v3136_v30 = vld [vmem:[%s3846_s10 + $0x18] sm:$0xff]  }
 0x629   : > { %2939 = vmatprep.subr.bf16.mxu0 %v3257_v18 }
 0x62c   : > { %2940 = vmatpush3.bf16.msra.mxu0 %v3127_v41 }
 0x62d   : > { %2941 = vmatprep.subr.bf16.mxu0 %v3257_v18 }
 0x630   : > { %2942 = vmatpush3.bf16.msra.mxu0 %v3128_v42  ;;  %v3141_v42 = vld [vmem:[%s3823_s4 + $0x30] sm:$0xff]  }
 0x631   : > { %2943 = vmatprep.subr.bf16.mxu0 %v3257_v18 }
 0x634   : > { %2944 = vmatpush3.bf16.msra.mxu0 %v3129_v43  ;;  %v3143_v43 = vld [vmem:[%s3823_s4 + $0x20] sm:$0xff]  }
 0x635   : > { %2945 = vmatprep.subr.bf16.mxu0 %v3257_v18 }
 0x638   : > { %2946 = vmatpush3.bf16.msra.mxu0 %v3130_v44  ;;  %v3144_v44 = vld [vmem:[%s3823_s4 + $0x18] sm:$0xff]  }
 0x639   : > { %2947 = vmatprep.subr.bf16.mxu0 %v3257_v18 }
 0x63c   : > { %2948 = vmatpush3.bf16.msra.mxu0 %v3131_v45  ;;  %v3146_v45 = vld [vmem:[%s3823_s4 + $0x8] sm:$0xff]  }
 0x63d   : > { %2973 = vmatprep.subr.bf16.mxu0 %v3257_v18 }
 0x6df   : > { %v2009_v47 = vpop.f32.mrf.mxu0 }
 0x6e0   : > { %v2010_v48 = vadd.f32 %v2712_v46, %v2009_v47 }
 0x6e1   : > { %v2931_v49 = vpop.f32.mrf.mxu0 }
 0x6e2   : > { %v2016_v50 = vmul.f32 0.16666667, %v2010_v48 }
 0x6e3   : > { %v2012_v53 = vpop.f32.mrf.mxu0 }
 0x6e4   : > { %v2018_v54 = vadd.f32 0.5, %v2016_v50  ;;  %v2013_v55 = vadd.f32 %v2712_v46, %v2012_v53  ;;  %v3147_v46 = vld [vmem:[%s3823_s4] sm:$0xff]   ;;  %s1091_s4 = scalar_lea.vmem %s3847_s6, %s2659_s3 }
 0x6e5   : > { %v2932_v56 = vpop.f32.mrf.mxu0 }
 0x6e6   : > { %v2020_v57 = vmax.f32 %v2018_v54, 0.0  ;;  %v2017_v58 = vmul.f32 0.16666667, %v2013_v55  ;;  %v2735_v55 = vld [vmem:[%s3432_s27] ss:$0 sm:$0xff] }
 0x6e8   : > { %v2019_v14 = vadd.f32 0.5, %v2017_v58  ;;  %v2022_v60 = vmin.f32 %v2020_v57, 1.0 }
 0x6ea   : > { %v2021_v10 = vmax.f32 %v2019_v14, 0.0  ;;  %v2024_v61 = vmul.f32 %v2022_v60, %v3642_v16  ;;  %v2026_v62 = vmul.f32 %v2022_v60, %v3644_v17 }
 0x6ec   : > { %v2023_v13 = vmin.f32 %v2021_v10, 1.0 }
 0x6ee   : > { %v2025_v63 = vmul.f32 %v2023_v13, %v3646_v21  ;;  %v2027_v0 = vmul.f32 %v2023_v13, %v3648_v22 }
 0x6f0   : > { %v2028_v2 = vpack.c.bf16 %v2025_v63, %v2024_v61  ;;  %v2153_v3 = vpack.c.bf16 %v2027_v0, %v2026_v62  ;;  %v2485_v62 = vld [vmem:[%s1091_s4] sm:$0xf]  ;;  %v2486_v63 = vld [vmem:[%s1091_s4 + $0x4] sm:$0xf]  ;;  %v3260_v0 = vmov 0   ;;  %s1078_s4 = sand.u32 1, %s3212_s23  }
 0x6f1   : > { %vm2487_vm4 = vcmp.gt.bf16.partialorder %v2485_v62, 1056980736  ;;  %vm2488_vm5 = vcmp.gt.bf16.partialorder %v2486_v63, 1056980736  ;;  %s2655_s3 = sshll.u32 %s1078_s4, 4  ;;  %s3751_s8 = scalar_lea.sflag [#allocation3], %s1078_s4 }
 0x6f2   : > { %2950 = vmatmul.mubr.bf16.vlgmr.msra.gmra.mxu0 %v2028_v2  ;;  %2970 = vmatmul.mubr.bf16.vlgmr.msra.gmra.mxu1 %v2153_v3  ;;  %v2490_v3 = vsel %vm2488_vm5, 65537, %v3260_v0  ;;  %s1080_s6 = scalar_lea.vmem [#allocation2], %s2655_s3  ;;  %s3164_s3 = sshll.u32 %s3261_s0, 4  ;;  %s3165_s3 = int_to_ptr.vmem [resolvable:$false] %s3164_s3 }
 0x6f3   : > { %2974 = vmatpush3.bf16.msra.mxu0 %v3132_v1  ;;  %2981 = vmatprep.mubr.msk.bf16.mxu0 %vm3258_vm1, %v3257_v18  ;;  %v2489_v1 = vsel %vm2487_vm4, 65537, %v3260_v0  ;;  %s2542_s5 = sshll.u32 %s1080_s6, 4  ;;  %s3166_s1 = scalar_lea.vmem %s3165_s3, 512  ;;  %s3749_s5 = int_to_ptr.vmem [resolvable:$true] %s2542_s5 }
 0x6f4   : > { %2975 = vmatprep.subr.bf16.mxu0 %v3257_v18  ;;  %3013 = vmatprep.mubr.msk.bf16.mxu1 %vm3258_vm1, %v3257_v18  ;;  %v2491_v2 = vunpack.c.l.b16 %v2489_v1  ;;  %p3167_p1 = scmp.lt.s32.totalorder %s3749_s5, %s3165_s3 }
 0x6f5   : > { %2998 = vmatpush3.bf16.msra.mxu1 %v3140_v7 }
 0x6f6   : > { %2999 = vmatprep.subr.bf16.mxu1 %v3257_v18  ;;  %vm2493_vm6 = vcmp.ne.s32.totalorder %v2491_v2, 0 }
 0x6f7   : > { %2976 = vmatpush3.bf16.msra.mxu0 %v3133_v4  ;;  %v2736_v4 = vld [vmem:[%s3848_s9] ss:$0 sm:$0xff]  ;;  %s3160_s9 = scalar_lea.vmem %s3749_s5, 256 }
 0x6f8   : > { %2977 = vmatprep.subr.bf16.mxu0 %v3257_v18  ;;  %p3161_p12 = scmp.ne.s32.totalorder %s3749_s5, %s3160_s9  ;;  %p3168_p2 = scmp.lt.s32.totalorder %s3166_s1, %s3160_s9 }
 0x6f9   : > { %3000 = vmatpush3.bf16.msra.mxu1 %v3141_v42 }
 0x6fa   : > { %3001 = vmatprep.subr.bf16.mxu1 %v3257_v18  ;;  %p3162_p13 = pnand %p3161_p12, %p3487_p5  ;;  %p3169_p3 = por %p3168_p2, %p3167_p1 }
 0x6fb   : > { %2978 = vmatpush3.bf16.msra.mxu0 %v3134_v5 }
 0x6fc   : > { %2979 = vmatprep.subr.bf16.mxu0 %v3257_v18  ;;  %p3163_p0 = pneg %p3162_p13 }
 0x6fd   : > { %3002 = vmatpush3.bf16.msra.mxu1 %v3142_v59 }
 0x6fe   : > { %3003 = vmatprep.subr.bf16.mxu1 %v3257_v18  ;;  %p3170_p4 = pnand %p3169_p3, %p3163_p0 }
 0x6ff   : > { %2980 = vmatpush3.bf16.msra.mxu0 %v3135_v6  ;;  %v2492_v6 = vunpack.c.l.b16 %v2490_v3 }
 0x700   : > { %2985 = vmatprep.subr.bf16.mxu0 %v3257_v18 }
 0x701   : > { %3004 = vmatpush3.bf16.msra.mxu1 %v3143_v43  ;;  %vm2494_vm7 = vcmp.ne.s32.totalorder %v2492_v6, 0 }
 0x702   : > { %3005 = vmatprep.subr.bf16.mxu1 %v3257_v18 }
 0x705   : > { %3006 = vmatpush3.bf16.msra.mxu1 %v3144_v44 }
 0x706   : > { %3007 = vmatprep.subr.bf16.mxu1 %v3257_v18 }
 0x709   : > { %3008 = vmatpush3.bf16.msra.mxu1 %v3145_v51 }
 0x70a   : > { %3009 = vmatprep.subr.bf16.mxu1 %v3257_v18 }
 0x70d   : > { %3010 = vmatpush3.bf16.msra.mxu1 %v3146_v45 }
 0x70e   : > { %3011 = vmatprep.subr.bf16.mxu1 %v3257_v18 }
 0x711   : > { %3012 = vmatpush3.bf16.msra.mxu1 %v3147_v46 }
 0x7b2   : > { %v2134_v11 = vpop.f32.mrf.mxu0  ;;  %v2188_v15 = vpop.f32.mrf.mxu1 }
 0x7b3   : > { %v2189_v20 = vadd.f32 %v2716_v9, %v2188_v15  ;;  %v2135_v35 = vadd.f32 %v2716_v9, %v2134_v11 }
 0x7b4   : > { %v2951_v16 = vpop.f32.mrf.mxu0  ;;  %v2971_v17 = vpop.f32.mrf.mxu1 }
 0x7b5   : > { %v2205_v28 = vadd.f32 %v2203_v24, %v2189_v20  ;;  %v2151_v40 = vadd.f32 %v2149_v39, %v2135_v35 }
 0x7b6   : > { %v2137_v21 = vpop.f32.mrf.mxu0  ;;  %v2191_v22 = vpop.f32.mrf.mxu1 }
 0x7b7   : > { %v2192_v23 = vadd.f32 %v2716_v9, %v2191_v22  ;;  %v2138_v34 = vadd.f32 %v2716_v9, %v2137_v21 }
 0x7b8   : > { %v2952_v26 = vpop.f32.mrf.mxu0  ;;  %v2972_v27 = vpop.f32.mrf.mxu1 }
 0x7b9   : > { %v2206_v29 = vadd.f32 %v2204_v25, %v2192_v23  ;;  %v2152_v38 = vadd.f32 %v2150_v36, %v2138_v34 }
 0x7bb   : > { %v2216_v31 = vpack.c.bf16 %v2206_v29, %v2205_v28  ;;  %v2207_v41 = vpack.c.bf16 %v2152_v38, %v2151_v40  ;;  %v2519_v29 = vlaneseq }
 0x7bd   : > { %2982 = vmatmul.mubr.msk.bf16.vlgmr.msra.gmra.mxu0 %vm1374_vm2, %v2216_v31  ;;  %v2520_v31 = vand.u32 127, %v2519_v29 }
 0x7be   : > { %2986 = vmatpush3.bf16.msra.mxu0 %v3136_v30  ;;  %2993 = vmatprep.mubr.msk.bf16.mxu0 %vm3258_vm1, %v3257_v18 }
 0x7bf   : > { %2987 = vmatprep.subr.bf16.mxu0 %v3257_v18  ;;  %vm2521_vm8 = vcmp.lt.s32.totalorder %v2520_v31, 40 }
 0x7c2   : > { %2988 = vmatpush3.bf16.msra.mxu0 %v3137_v33 }
 0x7c3   : > { %2989 = vmatprep.subr.bf16.mxu0 %v3257_v18 }
 0x7c6   : > { %2990 = vmatpush3.bf16.msra.mxu0 %v3138_v52 }
 0x7c7   : > { %2991 = vmatprep.subr.bf16.mxu0 %v3257_v18 }
 0x7ca   : > { %2992 = vmatpush3.bf16.msra.mxu0 %v3139_v37 }
 0x7cd   : > { %2994 = vmatmul.mubr.msk.bf16.vlgmr.msra.gmra.mxu0 %vm1374_vm2, %v2207_v41 }
 0x87d   : > { %v2286_v47 = vpop.f32.mrf.mxu0 }
 0x87f   : > { %v2983_v48 = vpop.f32.mrf.mxu0 }
 0x881   : > { %v2289_v49 = vpop.f32.mrf.mxu0 }
 0x883   : > { %v2984_v50 = vpop.f32.mrf.mxu0 }
 0x88d   : > { %v2354_v53 = vpop.f32.mrf.mxu0 }
 0x88e   : > { %v2355_v54 = vadd.f32 %v2354_v53, %v2286_v47 }
 0x88f   : > { %v2995_v56 = vpop.f32.mrf.mxu0 }
 0x890   : > { %v2368_v58 = vadd.f32 %v2735_v55, %v2355_v54 }
 0x891   : > { %v2357_v57 = vpop.f32.mrf.mxu0 }
 0x892   : > { %v2358_v14 = vadd.f32 %v2357_v57, %v2289_v49  ;;  %v2370_v13 = vmax.f32 %v2368_v58, 0.0 }
 0x893   : > { %v2996_v60 = vpop.f32.mrf.mxu0 }
 0x894   : > { %v2369_v10 = vadd.f32 %v2735_v55, %v2358_v14 }
 0x896   : > { %v2371_v61 = vmax.f32 %v2369_v10, 0.0 }
 0x898   : > { %v2372_v18 = vpack.c.bf16 %v2371_v61, %v2370_v13 }
 0x89a   : > { %3014 = vmatmul.mubr.bf16.vlgmr.msra.gmra.mxu1 %v2372_v18 }
 0x95a   : > { %v2478_v5 = vpop.f32.mrf.mxu1 }
 0x95b   : > { %v2479_v7 = vadd.f32 %v2736_v4, %v2478_v5 }
 0x95c   : > { %v3015_v8 = vpop.f32.mrf.mxu1 }
 0x95d   : > { %v2495_v9 = vsel %vm2493_vm6, %v2479_v7, -1e+08 }
 0x95e   : > { %2497 = vmax.xlane.f32.xlu0 %v2495_v9  ;;  %v2481_v11 = vpop.f32.mrf.mxu1 }
 0x95f   : > { %v2482_v15 = vadd.f32 %v2736_v4, %v2481_v11 }
 0x960   : > { %v3016_v16 = vpop.f32.mrf.mxu1 }
 0x961   : > { %v2496_v17 = vsel %vm2494_vm7, %v2482_v15, -1e+08 }
 0x962   : > { %2499 = vmax.xlane.f32.xlu1 %v2496_v17 }
 0x9e7   : > { %v2498_v19 = vpop.xlane.xlu0 %2497 }
 0x9e8   : > { %v2501_v20 = vsub.f32 %v2495_v9, %v2498_v19 }
 0x9ea   : > { %v2503_v21 = vmul.f32 1.442695, %v2501_v20 }
 0x9eb   : > { %v2500_v22 = vpop.xlane.xlu1 %2499 }
 0x9ec   : > { %3148 = vpow2.f32 %v2503_v21  ;;  %v2502_v23 = vsub.f32 %v2496_v17, %v2500_v22 }
 0x9ee   : > { %v2505_v24 = vmul.f32 1.442695, %v2502_v23 }
 0x9f0   : > { %3150 = vpow2.f32 %v2505_v24 }
 0x9f9   : > { %v3149_v25 = vpop.eup %3148 }
 0x9fa   : > { %2507 = vadd.xlane.f32.xlu0 %v3149_v25 }
 0x9fd   : > { %v3151_v26 = vpop.eup %3150 }
 0x9fe   : > { %2509 = vadd.xlane.f32.xlu0 %v3151_v26 }
 0xa83   : > { %v2508_v27 = vpop.xlane.xlu0 %2507 }
 0xa84   : > { %3152 = vlog2.f32 %v2508_v27 }
 0xa87   : > { %v2510_v28 = vpop.xlane.xlu0 %2509 }
 0xa88   : > { %3154 = vlog2.f32 %v2510_v28 }
 0xa89   : > { %3156 = vtanh.f32 %v2479_v7 }
 0xa8a   : > { %3158 = vtanh.f32 %v2482_v15 }
 0xa91   : > { %v3153_v30 = vpop.eup %3152 }
 0xa92   : > { %v2512_v32 = vmul.f32 0.6931472, %v3153_v30 }
 0xa94   : > { %v2515_v33 = vadd.f32 %v2512_v32, %v2498_v19 }
 0xa95   : > { %v3155_v52 = vpop.eup %3154 }
 0xa96   : > { %v2517_v12 = vsub.f32 %v2495_v9, %v2515_v33  ;;  %v2514_v34 = vmul.f32 0.6931472, %v3155_v52  ;;  %v3157_v35 = vpop.eup %3156 }
 0xa97   : > { %v3159_v39 = vpop.eup %3158 }
 0xa98   : > { %v2524_v36 = vsel %vm2521_vm8, %v2517_v12, %v3157_v35  ;;  %v2516_v37 = vadd.f32 %v2514_v34, %v2500_v22 }
 0xa99   : > { %2526 = vst [vmem:[%s1080_s6] sm:$0xff] %v2524_v36 }
 0xa9a   : > { %v2518_v38 = vsub.f32 %v2496_v17, %v2516_v37 }
 0xa9c   : > { %v2525_v40 = vsel %vm2521_vm8, %v2518_v38, %v3159_v39 }
 0xa9d   : > { %2527 = vst [vmem:[%s1080_s6 + $0x8] sm:$0xff] %v2525_v40 }
 0xa9e   : > { %3173 = shalt.err (!%p3170_p4)
}
 0xa9f   : > { %s3174_s4 = scalar_lea.hbm %s3747_s7, 256  ;;  %s3178_s6 = scalar_lea.hbm %s3447_s12, 512 }
 0xaa0   : > { %p3175_p7 = scmp.ne.s32.totalorder %s3747_s7, %s3174_s4  ;;  %p3179_p10 = scmp.lt.s32.totalorder %s3747_s7, %s3447_s12 }
 0xaa1   : > { %p3180_p11 = scmp.lt.s32.totalorder %s3178_s6, %s3174_s4 }
 0xaa2   : > { %p3176_p8 = pnand %p3175_p7, %p3487_p5 }
 0xaa3   : > { %p3181_p12 = por %p3180_p11, %p3179_p10 }
 0xaa4   : > { %p3177_p9 = pneg %p3176_p8 }
 0xaa6   : > { %p3182_p13 = pnand %p3181_p12, %p3177_p9 }
 0xaa8   : > { %3185 = shalt.err (!%p3182_p13)
}
 0xaa9   : > { %s3262_s9 = smov 128   ;;  %s3263_s0 = smov 8  }
 0xaaa   : > { %3017 = dma.vmem_to_hbm [thread:$0]  (%p3487_p5), %s3749_s5, 256, %s3747_s7, %s3751_s8, %s3262_s9, %s3262_s9, %s3263_s0  }
 0xaab PF: > { %p3023_p0 = scmp.ge.s32.totalorder %s3220_s28, 2  ;;  %s2557_s3 = sand.u32 1, %s3208_s22  }
 0xaac   : > { %s2558_s1 = scalar_lea.sflag [#allocation3], %s2557_s3 }
 0xaad   : > { %p3020_p1 = pnand %p3023_p0, %p3491_p6 }
 0xaaf   : > { %p3021_p2 = pneg %p3020_p1 }
 0xab1   : > { %3203 = dma.done.wait (%p3021_p2), %s2558_s1, 256  }
 0xab2   : > { %3205 = vsyncadd (%p3021_p2), %s2558_s1, 4294967040  ;;  %p81_p3 = scmp.ge.s32.totalorder %s3474_s2, 4   ;;  %s3849_s22 = smov %s3212_s23 }
 0xab3   : > { %s3850_s23 = smov %s3216_s26  ;;  %s3851_s26 = smov %s3485_s11 }
 0xab4   : > { %s3852_s28 = smov %s3474_s2  ;;  %83 = sbr.rel (!%p81_p3) target bundleno = 70 (0x46), region = 233 }
 0xab9   :  { %2563 = vsyncpa [#allocation3], 1 }
 0xaba   :  { %2565 = vsyncpa [#allocation3 + $0x1], 1 }

</bundles_post_ra>
